<compile_context>
chip_gen: v7x
topology: tpu7x:2x2x1
jax: 0.10.0
libtpu: 0.0.40
codegen_flags: <defaults>
</compile_context>

<pallas_src>
import functools

import jax
import jax.numpy as jnp
from jax.experimental import pallas as pl
from jax.experimental.pallas import tpu as pltpu

K_NEIGHBORS = 20
LEAKY_SLOPE = 0.2
VMEM_LIMIT = 48 * 1024 * 1024   # explicit scoped-VMEM cap; fits v5e/v6e/v7x


# ----------------------------------------------------------------------------
# Kernel 1: fused edge-conv (conv1x1, BN folded) + max over k neighbours + LReLU
# ----------------------------------------------------------------------------
def _edge_conv_max_kernel(x_ref, w_ref, shift_ref, o_ref, *, k, cin):
    """x_ref: (TN, k*cin) bf16 edge features in natural (neighbour-minor) layout.

    max_j LeakyReLU(x_j @ w + shift) == LeakyReLU(max_j(x_j @ w) + shift):
    shift is neighbour-independent and LeakyReLU(0.2) is monotone, so the
    epilogue (add + LeakyReLU + cast + store) runs once per row tile.
    """
    w = w_ref[...]
    acc = None
    for j in range(k):                                  # static unroll, static slices
        xj = x_ref[:, j * cin:(j + 1) * cin]            # (TN, cin) bf16
        y = jnp.dot(xj, w, preferred_element_type=jnp.float32)
        acc = y if acc is None else jnp.maximum(acc, y)
    acc = acc + shift_ref[...]
    acc = jnp.maximum(acc, LEAKY_SLOPE * acc)           # LeakyReLU(0.2)
    o_ref[...] = acc.astype(o_ref.dtype)                # single store per tile


def edge_conv_max(edge, w_eff, shift, *, tn=1024):
    """edge: (R, k*2C) bf16 -> (R, Cout) f32; max over k of LeakyReLU(BN(conv))."""
    R, KC = edge.shape
    cin, cout = w_eff.shape
    k = KC // cin
    TN = min(tn, R)                                     # cap block at 1024 rows (v7x safe)
    R_pad = pl.cdiv(R, TN) * TN
    if R_pad != R:
        edge = jnp.pad(edge, ((0, R_pad - R), (0, 0)))

    out = pl.pallas_call(
        functools.partial(_edge_conv_max_kernel, k=k, cin=cin),
        out_shape=jax.ShapeDtypeStruct((R_pad, cout), jnp.float32),
        grid_spec=pltpu.PrefetchScalarGridSpec(
            num_scalar_prefetch=0,
            grid=(R_pad // TN,),
            in_specs=[
                pl.BlockSpec((TN, KC), lambda i: (i, 0)),
                pl.BlockSpec((cin, cout), lambda i: (0, 0)),
                pl.BlockSpec((1, cout), lambda i: (0, 0)),
            ],
            out_specs=pl.BlockSpec((TN, cout), lambda i: (i, 0)),
        ),
        compiler_params=pltpu.CompilerParams(
            dimension_semantics=("parallel",),
            vmem_limit_bytes=VMEM_LIMIT),
    )(edge, w_eff, shift.reshape(1, cout).astype(jnp.float32))
    return out[:R] if R_pad != R else out


# ----------------------------------------------------------------------------
# Kernel 2: fused transformer chain (tf1, tf2 x3) + concat + conv4 + transpose
# ----------------------------------------------------------------------------
def _layer_norm(x, gamma, beta, eps=1e-5):
    mu = jnp.mean(x, axis=-1, keepdims=True)
    var = jnp.mean(jnp.square(x - mu), axis=-1, keepdims=True)
    return (x - mu) * jax.lax.rsqrt(var + eps) * gamma + beta


def _tf_layer(x, prm, *, heads, dim_head):
    """One PreNorm transformer layer on an (N, D) f32 value; params resident in VMEM."""
    ln1g, ln1b, wqkv, wo, bo, ln2g, ln2b, w1, b1, w2, b2 = prm
    inner = heads * dim_head

    # ---- attention branch (softmax scale pre-folded into the q columns of Wqkv)
    xn = _layer_norm(x, ln1g[...], ln1b[...])
    qkv = jnp.dot(xn.astype(jnp.bfloat16), wqkv[...],
                  preferred_element_type=jnp.float32)            # (N, 3*inner)
    head_outs = []
    for h in range(heads):
        q = qkv[:, h * dim_head:(h + 1) * dim_head]
        kk = qkv[:, inner + h * dim_head: inner + (h + 1) * dim_head]
        v = qkv[:, 2 * inner + h * dim_head: 2 * inner + (h + 1) * dim_head]
        dots = jnp.dot(q, kk.T, preferred_element_type=jnp.float32)   # (N, N)
        dots = dots - jnp.max(dots, axis=-1, keepdims=True)
        e = jnp.exp(dots)
        attn = e * pl.reciprocal(jnp.sum(e, axis=-1, keepdims=True), approx=True)
        head_outs.append(jnp.dot(attn, v, preferred_element_type=jnp.float32))
    att = jnp.concatenate(head_outs, axis=-1)                    # (N, inner) values only
    att = jnp.dot(att.astype(jnp.bfloat16), wo[...],
                  preferred_element_type=jnp.float32) + bo[...]
    x = x + att                                                  # dropout = id (eval)

    # ---- feed-forward branch
    xn = _layer_norm(x, ln2g[...], ln2b[...])
    h1 = jnp.dot(xn.astype(jnp.bfloat16), w1[...],
                 preferred_element_type=jnp.float32) + b1[...]
    h1 = jax.nn.gelu(h1, approximate=True)   # TODO(synk): PyTorch default GELU is exact erf
    h2 = jnp.dot(h1.astype(jnp.bfloat16), w2[...],
                 preferred_element_type=jnp.float32) + b2[...]
    return x + h2


def _tf_chain_conv4_kernel(x_ref, *rest, heads, dim_head):
    t1 = rest[0:11]
    t2 = rest[11:22]
    c4_w_ref, c4_shift_ref, o_ref = rest[22], rest[23], rest[24]

    x = x_ref[0].astype(jnp.float32)                              # (N, 192)
    layer = functools.partial(_tf_layer, heads=heads, dim_head=dim_head)
    xf1 = layer(x, t1)
    xf2 = layer(xf1, t2)        # PyTorch forward reuses tf2 for layers 2..4
    xf3 = layer(xf2, t2)
    xf4 = layer(xf3, t2)

    xf = jnp.concatenate([xf1, xf2, xf3, xf4], axis=-1)           # (N, 768)
    y = jnp.dot(xf.astype(jnp.bfloat16), c4_w_ref[...],
                preferred_element_type=jnp.float32) + c4_shift_ref[...]
    y = jnp.maximum(y, LEAKY_SLOPE * y)                           # (N, 1024)
    o_ref[0] = y.T.astype(o_ref.dtype)                            # fused output transpose


def _tf_arrays(p):
    row = lambda a: a.reshape(1, -1).astype(jnp.float32)
    return (row(p["ln1_g"]), row(p["ln1_b"]), p["wqkv"], p["wo"], row(p["bo"]),
            row(p["ln2_g"]), row(p["ln2_b"]), p["w1"], row(p["b1"]),
            p["w2"], row(p["b2"]))


def tf_chain_conv4(feats, tf1, tf2, c4_w, c4_shift, *, heads=4, dim_head=4):
    """feats: (B, N, 192) f32 -> (B, 1024, N) f32.  One fused call, grid over B."""
    B, N, D = feats.shape
    cout = c4_w.shape[1]
    t1 = _tf_arrays(tf1)
    t2 = _tf_arrays(tf2)
    c4_shift2 = c4_shift.reshape(1, cout).astype(jnp.float32)

    full2d = lambda a: pl.BlockSpec(a.shape, lambda b: (0, 0))
    in_specs = ([pl.BlockSpec((1, N, D), lambda b: (b, 0, 0))]
                + [full2d(a) for a in t1]
                + [full2d(a) for a in t2]
                + [full2d(c4_w), full2d(c4_shift2)])

    # TODO(synk): grid=(B,) only; on v7x add a q-row-tile grid axis so both
    #             TensorCores get work when B is small.
    # TODO(synk): (N,N) attention scores live in VMEM; for N >~ 2k switch the
    #             attention branch to a flash-style kv-tiled loop.
    return pl.pallas_call(
        functools.partial(_tf_chain_conv4_kernel, heads=heads, dim_head=dim_head),
        out_shape=jax.ShapeDtypeStruct((B, cout, N), jnp.float32),
        grid_spec=pltpu.PrefetchScalarGridSpec(
            num_scalar_prefetch=0,
            grid=(B,),
            in_specs=in_specs,
            out_specs=pl.BlockSpec((1, cout, N), lambda b: (b, 0, 0)),
        ),
        compiler_params=pltpu.CompilerParams(
            dimension_semantics=("parallel",),
            vmem_limit_bytes=VMEM_LIMIT),
    )(feats, *t1, *t2, c4_w, c4_shift2)


# ----------------------------------------------------------------------------
# JAX glue: knn + graph-feature construction (data-dependent gather)
# ----------------------------------------------------------------------------
def build_graph_feature(x_bnc, k):
    """x: (B, N, C) -> edge features (B*N, k*2C) bf16, natural layout (no transpose)."""
    B, N, C = x_bnc.shape
    xf = x_bnc.astype(jnp.float32)
    sq = jnp.sum(xf * xf, axis=-1)                             # (B, N)
    inner = jnp.einsum("bnc,bmc->bnm", xf, xf)                 # (B, N, N)
    neg_d = 2.0 * inner - sq[:, :, None] - sq[:, None, :]      # -||xi - xj||^2
    idx = jax.lax.top_k(neg_d, k)[1]                           # (B, N, k) nearest
    nbr = jax.vmap(lambda pts, ind: pts[ind])(xf, idx)         # (B, N, k, C) f32 gather
    center = jnp.broadcast_to(xf[:, :, None, :], nbr.shape)
    # difference in f32 (bf16 would catastrophically cancel on near-equal coords)
    edge = jnp.concatenate([nbr - center, center], axis=-1)    # (B, N, k, 2C)
    return edge.astype(jnp.bfloat16).reshape(B * N, k * 2 * C)


# ----------------------------------------------------------------------------
# Parameter initialization (deterministic, synthetic) with BN / scale folding
# ----------------------------------------------------------------------------
def init_conv_bn(key, cin, cout, eps=1e-5):
    kw, k1, k2, k3, k4 = jax.random.split(key, 5)
    w = jax.random.normal(kw, (cin, cout), jnp.float32) / (cin ** 0.5)
    gamma = 1.0 + 0.1 * jax.random.normal(k1, (cout,), jnp.float32)
    beta = 0.1 * jax.random.normal(k2, (cout,), jnp.float32)
    mean = 0.1 * jax.random.normal(k3, (cout,), jnp.float32)
    var = jnp.abs(jax.random.normal(k4, (cout,), jnp.float32)) + 0.5
    scale = gamma / jnp.sqrt(var + eps)
    # Fold BN scale into weight columns (bias-free convs); epilogue = add shift.
    return {"w_eff": (w * scale[None, :]).astype(jnp.bfloat16),
            "shift": (beta - mean * scale).astype(jnp.float32)}


def init_transformer(key, dim=192, heads=4, dim_head=4, mlp_dim=768):
    inner = heads * dim_head
    ks = jax.random.split(key, 11)
    nrm = lambda k_, shape, fan: (jax.random.normal(k_, shape, jnp.float32)
                                  / (fan ** 0.5))
    wqkv = nrm(ks[2], (dim, 3 * inner), dim)
    # Fold the softmax 1/sqrt(dim_head) scale into the q columns of Wqkv
    # (saves an (N,N) multiply per head per layer inside the kernel).
    wqkv = wqkv.at[:, :inner].multiply(dim_head ** -0.5)
    return {
        "ln1_g": 1.0 + 0.05 * jax.random.normal(ks[0], (dim,), jnp.float32),
        "ln1_b": 0.05 * jax.random.normal(ks[1], (dim,), jnp.float32),
        "wqkv": wqkv.astype(jnp.bfloat16),
        "wo": nrm(ks[3], (inner, dim), inner).astype(jnp.bfloat16),
        "bo": 0.05 * jax.random.normal(ks[4], (dim,), jnp.float32),
        "ln2_g": 1.0 + 0.05 * jax.random.normal(ks[5], (dim,), jnp.float32),
        "ln2_b": 0.05 * jax.random.normal(ks[6], (dim,), jnp.float32),
        "w1": nrm(ks[7], (dim, mlp_dim), dim).astype(jnp.bfloat16),
        "b1": 0.05 * jax.random.normal(ks[8], (mlp_dim,), jnp.float32),
        "w2": nrm(ks[9], (mlp_dim, dim), mlp_dim).astype(jnp.bfloat16),
        "b2": 0.05 * jax.random.normal(ks[10], (dim,), jnp.float32),
    }


def make_params():
    keys = iter(jax.random.split(jax.random.PRNGKey(1), 16))
    nk = lambda: next(keys)
    return {
        "conv1": init_conv_bn(nk(), 6, 64),
        "conv2": init_conv_bn(nk(), 128, 64),
        "conv3": init_conv_bn(nk(), 128, 64),
        "tf1": init_transformer(nk()),
        "tf2": init_transformer(nk()),
        "tf3": init_transformer(nk()),   # constructed but unused (matches PyTorch forward)
        "tf4": init_transformer(nk()),   # constructed but unused (matches PyTorch forward)
        "conv4": init_conv_bn(nk(), 768, 1024),
    }


# ----------------------------------------------------------------------------
# Forward pass (glue in JAX, hot path in Pallas)
# ----------------------------------------------------------------------------
def dg_tf_encoder_forward(x_bn3, params):
    """x: (B, N, 3) point cloud -> (B, 1024, N) features (PyTorch NCW layout)."""
    B, N, _ = x_bn3.shape
    k = K_NEIGHBORS
    p = params

    e1 = build_graph_feature(x_bn3, k)                                        # (B*N, k*6)
    x1 = edge_conv_max(e1, p["conv1"]["w_eff"], p["conv1"]["shift"]).reshape(B, N, 64)
    e2 = build_graph_feature(x1, k)                                           # (B*N, k*128)
    x2 = edge_conv_max(e2, p["conv2"]["w_eff"], p["conv2"]["shift"]).reshape(B, N, 64)
    e3 = build_graph_feature(x2, k)                                           # (B*N, k*128)
    x3 = edge_conv_max(e3, p["conv3"]["w_eff"], p["conv3"]["shift"]).reshape(B, N, 64)

    feats = jnp.concatenate([x1, x2, x3], axis=-1)                            # (B, N, 192) f32
    # 4 transformer layers + 768-wide concat + conv4 + final transpose: one call.
    return tf_chain_conv4(feats, p["tf1"], p["tf2"],
                          p["conv4"]["w_eff"], p["conv4"]["shift"])           # (B, 1024, N)


# ----------------------------------------------------------------------------
if __name__ == "__main__":
    B, N = 2, 64          # N must be >= k=20
    params = make_params()
    x = jax.random.normal(jax.random.PRNGKey(0), (B, N, 3), jnp.float32)

    out = jax.block_until_ready(dg_tf_encoder_forward(x, params))
    assert out.shape == (B, 1024, N), out.shape
    assert bool(jnp.all(jnp.isfinite(out)))
    print("KERNEL_OK")
</pallas_src>

<mosaic_0001>
module attributes {stable_mosaic.version = 11 : i64} {
  func.func @_edge_conv_max_kernel(%arg0: i32, %arg1: memref<128x120xbf16, #tpu.memory_space<vmem>>, %arg2: memref<6x64xbf16, #tpu.memory_space<vmem>>, %arg3: memref<1x64xf32, #tpu.memory_space<vmem>>, %arg4: memref<128x64xf32, #tpu.memory_space<vmem>>) attributes {dimension_semantics = [#tpu.dimension_semantics<parallel>], iteration_bounds = array<i64: 1>, scalar_prefetch = 0 : i64, scratch_operands = 0 : i64, tpu.core_type = #tpu.core_type<tc>, window_params = [{transform_indices = @transform_0, window_bounds = array<i64: 128, 120>}, {pipeline_mode = #tpu.pipeline_mode<synchronous>, transform_indices = @transform_1, window_bounds = array<i64: 6, 64>}, {pipeline_mode = #tpu.pipeline_mode<synchronous>, transform_indices = @transform_2, window_bounds = array<i64: 1, 64>}, {transform_indices = @transform_3, window_bounds = array<i64: 128, 64>}]} {
    %c0 = arith.constant 0 : index
    %c0_0 = arith.constant 0 : index
    %0 = vector.load %arg2[%c0, %c0_0] : memref<6x64xbf16, #tpu.memory_space<vmem>>, vector<6x64xbf16>
    %c0_1 = arith.constant 0 : index
    %c0_2 = arith.constant 0 : index
    %1 = vector.load %arg1[%c0_1, %c0_2] : memref<128x120xbf16, #tpu.memory_space<vmem>>, vector<128x6xbf16>
    %cst = arith.constant dense<0.000000e+00> : vector<128x64xf32>
    %2 = tpu.matmul %1, %0, %cst {dimension_numbers = #tpu.dot_dimension_numbers<[1], [0], [0], [1], [0, 0, 1, 1], [], []>} : vector<128x6xbf16>, vector<6x64xbf16>, vector<128x64xf32> -> vector<128x64xf32>
    %c0_3 = arith.constant 0 : index
    %c6 = arith.constant 6 : index
    %3 = vector.load %arg1[%c0_3, %c6] : memref<128x120xbf16, #tpu.memory_space<vmem>>, vector<128x6xbf16>
    %cst_4 = arith.constant dense<0.000000e+00> : vector<128x64xf32>
    %4 = tpu.matmul %3, %0, %cst_4 {dimension_numbers = #tpu.dot_dimension_numbers<[1], [0], [0], [1], [0, 0, 1, 1], [], []>} : vector<128x6xbf16>, vector<6x64xbf16>, vector<128x64xf32> -> vector<128x64xf32>
    %5 = arith.maximumf %2, %4 : vector<128x64xf32>
    %c0_5 = arith.constant 0 : index
    %c12 = arith.constant 12 : index
    %6 = vector.load %arg1[%c0_5, %c12] : memref<128x120xbf16, #tpu.memory_space<vmem>>, vector<128x6xbf16>
    %cst_6 = arith.constant dense<0.000000e+00> : vector<128x64xf32>
    %7 = tpu.matmul %6, %0, %cst_6 {dimension_numbers = #tpu.dot_dimension_numbers<[1], [0], [0], [1], [0, 0, 1, 1], [], []>} : vector<128x6xbf16>, vector<6x64xbf16>, vector<128x64xf32> -> vector<128x64xf32>
    %8 = arith.maximumf %5, %7 : vector<128x64xf32>
    %c0_7 = arith.constant 0 : index
    %c18 = arith.constant 18 : index
    %9 = vector.load %arg1[%c0_7, %c18] : memref<128x120xbf16, #tpu.memory_space<vmem>>, vector<128x6xbf16>
    %cst_8 = arith.constant dense<0.000000e+00> : vector<128x64xf32>
    %10 = tpu.matmul %9, %0, %cst_8 {dimension_numbers = #tpu.dot_dimension_numbers<[1], [0], [0], [1], [0, 0, 1, 1], [], []>} : vector<128x6xbf16>, vector<6x64xbf16>, vector<128x64xf32> -> vector<128x64xf32>
    %11 = arith.maximumf %8, %10 : vector<128x64xf32>
    %c0_9 = arith.constant 0 : index
    %c24 = arith.constant 24 : index
    %12 = vector.load %arg1[%c0_9, %c24] : memref<128x120xbf16, #tpu.memory_space<vmem>>, vector<128x6xbf16>
    %cst_10 = arith.constant dense<0.000000e+00> : vector<128x64xf32>
    %13 = tpu.matmul %12, %0, %cst_10 {dimension_numbers = #tpu.dot_dimension_numbers<[1], [0], [0], [1], [0, 0, 1, 1], [], []>} : vector<128x6xbf16>, vector<6x64xbf16>, vector<128x64xf32> -> vector<128x64xf32>
    %14 = arith.maximumf %11, %13 : vector<128x64xf32>
    %c0_11 = arith.constant 0 : index
    %c30 = arith.constant 30 : index
    %15 = vector.load %arg1[%c0_11, %c30] : memref<128x120xbf16, #tpu.memory_space<vmem>>, vector<128x6xbf16>
    %cst_12 = arith.constant dense<0.000000e+00> : vector<128x64xf32>
    %16 = tpu.matmul %15, %0, %cst_12 {dimension_numbers = #tpu.dot_dimension_numbers<[1], [0], [0], [1], [0, 0, 1, 1], [], []>} : vector<128x6xbf16>, vector<6x64xbf16>, vector<128x64xf32> -> vector<128x64xf32>
    %17 = arith.maximumf %14, %16 : vector<128x64xf32>
    %c0_13 = arith.constant 0 : index
    %c36 = arith.constant 36 : index
    %18 = vector.load %arg1[%c0_13, %c36] : memref<128x120xbf16, #tpu.memory_space<vmem>>, vector<128x6xbf16>
    %cst_14 = arith.constant dense<0.000000e+00> : vector<128x64xf32>
    %19 = tpu.matmul %18, %0, %cst_14 {dimension_numbers = #tpu.dot_dimension_numbers<[1], [0], [0], [1], [0, 0, 1, 1], [], []>} : vector<128x6xbf16>, vector<6x64xbf16>, vector<128x64xf32> -> vector<128x64xf32>
    %20 = arith.maximumf %17, %19 : vector<128x64xf32>
    %c0_15 = arith.constant 0 : index
    %c42 = arith.constant 42 : index
    %21 = vector.load %arg1[%c0_15, %c42] : memref<128x120xbf16, #tpu.memory_space<vmem>>, vector<128x6xbf16>
    %cst_16 = arith.constant dense<0.000000e+00> : vector<128x64xf32>
    %22 = tpu.matmul %21, %0, %cst_16 {dimension_numbers = #tpu.dot_dimension_numbers<[1], [0], [0], [1], [0, 0, 1, 1], [], []>} : vector<128x6xbf16>, vector<6x64xbf16>, vector<128x64xf32> -> vector<128x64xf32>
    %23 = arith.maximumf %20, %22 : vector<128x64xf32>
    %c0_17 = arith.constant 0 : index
    %c48 = arith.constant 48 : index
    %24 = vector.load %arg1[%c0_17, %c48] : memref<128x120xbf16, #tpu.memory_space<vmem>>, vector<128x6xbf16>
    %cst_18 = arith.constant dense<0.000000e+00> : vector<128x64xf32>
    %25 = tpu.matmul %24, %0, %cst_18 {dimension_numbers = #tpu.dot_dimension_numbers<[1], [0], [0], [1], [0, 0, 1, 1], [], []>} : vector<128x6xbf16>, vector<6x64xbf16>, vector<128x64xf32> -> vector<128x64xf32>
    %26 = arith.maximumf %23, %25 : vector<128x64xf32>
    %c0_19 = arith.constant 0 : index
    %c54 = arith.constant 54 : index
    %27 = vector.load %arg1[%c0_19, %c54] : memref<128x120xbf16, #tpu.memory_space<vmem>>, vector<128x6xbf16>
    %cst_20 = arith.constant dense<0.000000e+00> : vector<128x64xf32>
    %28 = tpu.matmul %27, %0, %cst_20 {dimension_numbers = #tpu.dot_dimension_numbers<[1], [0], [0], [1], [0, 0, 1, 1], [], []>} : vector<128x6xbf16>, vector<6x64xbf16>, vector<128x64xf32> -> vector<128x64xf32>
    %29 = arith.maximumf %26, %28 : vector<128x64xf32>
    %c0_21 = arith.constant 0 : index
    %c60 = arith.constant 60 : index
    %30 = vector.load %arg1[%c0_21, %c60] : memref<128x120xbf16, #tpu.memory_space<vmem>>, vector<128x6xbf16>
    %cst_22 = arith.constant dense<0.000000e+00> : vector<128x64xf32>
    %31 = tpu.matmul %30, %0, %cst_22 {dimension_numbers = #tpu.dot_dimension_numbers<[1], [0], [0], [1], [0, 0, 1, 1], [], []>} : vector<128x6xbf16>, vector<6x64xbf16>, vector<128x64xf32> -> vector<128x64xf32>
    %32 = arith.maximumf %29, %31 : vector<128x64xf32>
    %c0_23 = arith.constant 0 : index
    %c66 = arith.constant 66 : index
    %33 = vector.load %arg1[%c0_23, %c66] : memref<128x120xbf16, #tpu.memory_space<vmem>>, vector<128x6xbf16>
    %cst_24 = arith.constant dense<0.000000e+00> : vector<128x64xf32>
    %34 = tpu.matmul %33, %0, %cst_24 {dimension_numbers = #tpu.dot_dimension_numbers<[1], [0], [0], [1], [0, 0, 1, 1], [], []>} : vector<128x6xbf16>, vector<6x64xbf16>, vector<128x64xf32> -> vector<128x64xf32>
    %35 = arith.maximumf %32, %34 : vector<128x64xf32>
    %c0_25 = arith.constant 0 : index
    %c72 = arith.constant 72 : index
    %36 = vector.load %arg1[%c0_25, %c72] : memref<128x120xbf16, #tpu.memory_space<vmem>>, vector<128x6xbf16>
    %cst_26 = arith.constant dense<0.000000e+00> : vector<128x64xf32>
    %37 = tpu.matmul %36, %0, %cst_26 {dimension_numbers = #tpu.dot_dimension_numbers<[1], [0], [0], [1], [0, 0, 1, 1], [], []>} : vector<128x6xbf16>, vector<6x64xbf16>, vector<128x64xf32> -> vector<128x64xf32>
    %38 = arith.maximumf %35, %37 : vector<128x64xf32>
    %c0_27 = arith.constant 0 : index
    %c78 = arith.constant 78 : index
    %39 = vector.load %arg1[%c0_27, %c78] : memref<128x120xbf16, #tpu.memory_space<vmem>>, vector<128x6xbf16>
    %cst_28 = arith.constant dense<0.000000e+00> : vector<128x64xf32>
    %40 = tpu.matmul %39, %0, %cst_28 {dimension_numbers = #tpu.dot_dimension_numbers<[1], [0], [0], [1], [0, 0, 1, 1], [], []>} : vector<128x6xbf16>, vector<6x64xbf16>, vector<128x64xf32> -> vector<128x64xf32>
    %41 = arith.maximumf %38, %40 : vector<128x64xf32>
    %c0_29 = arith.constant 0 : index
    %c84 = arith.constant 84 : index
    %42 = vector.load %arg1[%c0_29, %c84] : memref<128x120xbf16, #tpu.memory_space<vmem>>, vector<128x6xbf16>
    %cst_30 = arith.constant dense<0.000000e+00> : vector<128x64xf32>
    %43 = tpu.matmul %42, %0, %cst_30 {dimension_numbers = #tpu.dot_dimension_numbers<[1], [0], [0], [1], [0, 0, 1, 1], [], []>} : vector<128x6xbf16>, vector<6x64xbf16>, vector<128x64xf32> -> vector<128x64xf32>
    %44 = arith.maximumf %41, %43 : vector<128x64xf32>
    %c0_31 = arith.constant 0 : index
    %c90 = arith.constant 90 : index
    %45 = vector.load %arg1[%c0_31, %c90] : memref<128x120xbf16, #tpu.memory_space<vmem>>, vector<128x6xbf16>
    %cst_32 = arith.constant dense<0.000000e+00> : vector<128x64xf32>
    %46 = tpu.matmul %45, %0, %cst_32 {dimension_numbers = #tpu.dot_dimension_numbers<[1], [0], [0], [1], [0, 0, 1, 1], [], []>} : vector<128x6xbf16>, vector<6x64xbf16>, vector<128x64xf32> -> vector<128x64xf32>
    %47 = arith.maximumf %44, %46 : vector<128x64xf32>
    %c0_33 = arith.constant 0 : index
    %c96 = arith.constant 96 : index
    %48 = vector.load %arg1[%c0_33, %c96] : memref<128x120xbf16, #tpu.memory_space<vmem>>, vector<128x6xbf16>
    %cst_34 = arith.constant dense<0.000000e+00> : vector<128x64xf32>
    %49 = tpu.matmul %48, %0, %cst_34 {dimension_numbers = #tpu.dot_dimension_numbers<[1], [0], [0], [1], [0, 0, 1, 1], [], []>} : vector<128x6xbf16>, vector<6x64xbf16>, vector<128x64xf32> -> vector<128x64xf32>
    %50 = arith.maximumf %47, %49 : vector<128x64xf32>
    %c0_35 = arith.constant 0 : index
    %c102 = arith.constant 102 : index
    %51 = vector.load %arg1[%c0_35, %c102] : memref<128x120xbf16, #tpu.memory_space<vmem>>, vector<128x6xbf16>
    %cst_36 = arith.constant dense<0.000000e+00> : vector<128x64xf32>
    %52 = tpu.matmul %51, %0, %cst_36 {dimension_numbers = #tpu.dot_dimension_numbers<[1], [0], [0], [1], [0, 0, 1, 1], [], []>} : vector<128x6xbf16>, vector<6x64xbf16>, vector<128x64xf32> -> vector<128x64xf32>
    %53 = arith.maximumf %50, %52 : vector<128x64xf32>
    %c0_37 = arith.constant 0 : index
    %c108 = arith.constant 108 : index
    %54 = vector.load %arg1[%c0_37, %c108] : memref<128x120xbf16, #tpu.memory_space<vmem>>, vector<128x6xbf16>
    %cst_38 = arith.constant dense<0.000000e+00> : vector<128x64xf32>
    %55 = tpu.matmul %54, %0, %cst_38 {dimension_numbers = #tpu.dot_dimension_numbers<[1], [0], [0], [1], [0, 0, 1, 1], [], []>} : vector<128x6xbf16>, vector<6x64xbf16>, vector<128x64xf32> -> vector<128x64xf32>
    %56 = arith.maximumf %53, %55 : vector<128x64xf32>
    %c0_39 = arith.constant 0 : index
    %c114 = arith.constant 114 : index
    %57 = vector.load %arg1[%c0_39, %c114] : memref<128x120xbf16, #tpu.memory_space<vmem>>, vector<128x6xbf16>
    %cst_40 = arith.constant dense<0.000000e+00> : vector<128x64xf32>
    %58 = tpu.matmul %57, %0, %cst_40 {dimension_numbers = #tpu.dot_dimension_numbers<[1], [0], [0], [1], [0, 0, 1, 1], [], []>} : vector<128x6xbf16>, vector<6x64xbf16>, vector<128x64xf32> -> vector<128x64xf32>
    %59 = arith.maximumf %56, %58 : vector<128x64xf32>
    %c0_41 = arith.constant 0 : index
    %c0_42 = arith.constant 0 : index
    %60 = vector.load %arg3[%c0_41, %c0_42] : memref<1x64xf32, #tpu.memory_space<vmem>>, vector<1x64xf32>
    %61 = vector.broadcast %60 : vector<1x64xf32> to vector<128x64xf32>
    %62 = arith.addf %59, %61 : vector<128x64xf32>
    %cst_43 = arith.constant 2.000000e-01 : f32
    %63 = vector.broadcast %cst_43 : f32 to vector<128x64xf32>
    %64 = arith.mulf %63, %62 : vector<128x64xf32>
    %65 = arith.maximumf %62, %64 : vector<128x64xf32>
    %c0_44 = arith.constant 0 : index
    %c0_45 = arith.constant 0 : index
    %66 = vector.load %arg4[%c0_44, %c0_45] : memref<128x64xf32, #tpu.memory_space<vmem>>, vector<128x64xf32>
    tpu.vector_store %arg4[%c0_44, %c0_45], %65 {strides = array<i32>} : memref<128x64xf32, #tpu.memory_space<vmem>>, vector<128x64xf32>,
    return
  }
  func.func @transform_0(%arg0: i32) -> (i32, i32) {
    %c0_i32 = arith.constant 0 : i32
    %c0_i32_0 = arith.constant 0 : i32
    return %arg0, %c0_i32 : i32, i32
  }
  func.func @transform_1(%arg0: i32) -> (i32, i32) {
    %c0_i32 = arith.constant 0 : i32
    %c0_i32_0 = arith.constant 0 : i32
    %c0_i32_1 = arith.constant 0 : i32
    return %c0_i32, %c0_i32_0 : i32, i32
  }
  func.func @transform_2(%arg0: i32) -> (i32, i32) {
    %c0_i32 = arith.constant 0 : i32
    %c0_i32_0 = arith.constant 0 : i32
    %c0_i32_1 = arith.constant 0 : i32
    return %c0_i32, %c0_i32_0 : i32, i32
  }
  func.func @transform_3(%arg0: i32) -> (i32, i32) {
    %c0_i32 = arith.constant 0 : i32
    %c0_i32_0 = arith.constant 0 : i32
    return %arg0, %c0_i32 : i32, i32
  }
}

</mosaic_0001>

<bundles_post_ra>
// kernel: tpu_custom_call.1
= control target key start
LH: loop header
LB: loop body
LE: loop exit
PB: predicated region body
PF: predicated region fallthrough
CT: control target
= control target key end

     0   :  { %vm72_vm0 = vcmask 48128   ;;  %s3937_s16 = smov 122   ;;  %vm97_vm1 = vcmask 1042432   ;;  %s3939_s30 = smov 110   ;;  %vm3160_vm2 = vcmask 523264   ;;  %s5054_s0 = inlined_call_operand.vmem [shape: bf16[128,120], index: 0, kind: input, shape index: {}]   ;;  %s5055_s1 = inlined_call_operand.vmem [shape: bf16[6,64], index: 1, kind: input, shape index: {}]   ;;  %s5056_s2 = inlined_call_operand.vmem [shape: f32[1,64], index: 2, kind: input, shape index: {}]   ;;  %s5057_s3 = inlined_call_operand.vmem [shape: f32[128,64], index: 3, kind: output, shape index: {}]  }
   0x1   :  { %v3979_v0 = vld [vmem:[%s5054_s0] sm:$0xff]   ;;  %v3984_v1 = vld [vmem:[%s5054_s0 + $0x10] sm:$0xff]   ;;  %v3990_v2 = vld [vmem:[%s5054_s0 + $0x8] sm:$0xff]   ;;  %s3940_s4 = smov 104   ;;  %s3941_s5 = smov 98  }
   0x2   :  { %198 = vrot.lane.b32.xlu0 %v3979_v0, %s3937_s16  ;;  %3532 = vmatprep.mubr.msk.bf16.mxu0 %vm72_vm0, %v3979_v0  ;;  %v3998_v3 = vld [vmem:[%s5054_s0 + $0x18] sm:$0xff]   ;;  %v4004_v4 = vld [vmem:[%s5054_s0 + $0x20] sm:$0xff]   ;;  %v4010_v5 = vld [vmem:[%s5054_s0 + $0x28] sm:$0xff]   ;;  %s3942_s6 = smov 92   ;;  %s3943_s7 = smov 86  }
   0x3   :  { %202 = vrot.lane.b32.xlu1 %v3984_v1, %s3937_s16  ;;  %v4015_v6 = vld [vmem:[%s5055_s1] sm:$0x7]  ;;  %v4029_v8 = vld [vmem:[%s5054_s0 + $0x30] sm:$0xff]   ;;  %v4036_v9 = vld [vmem:[%s5054_s0 + $0x38] sm:$0xff]   ;;  %s3938_s0 = smov 116   ;;  %s3944_s8 = smov 80  }
   0x4   :  { %3890 = vmatprep.subr.msk.bf16.mxu0 %vm97_vm1, %v4015_v6  ;;  %v4021_v7 = vsel %vm97_vm1, %v4015_v6, 0  ;;  %3891 = vmatprep.subr.msk.bf16.mxu1 %vm97_vm1, %v4015_v6  ;;  %s3945_s9 = smov 74   ;;  %s3946_s10 = smov 68  }
   0x5   :  { %3531 = vmatpush3.bf16.msra.mxu0 %v4021_v7  ;;  %3549 = vmatpush3.bf16.msra.mxu1 %v4021_v7  ;;  %s3947_s11 = smov 62   ;;  %s3948_s12 = smov 56  }
   0x6   :  { %200 = vrot.lane.b32.xlu0 %v3990_v2, %s3937_s16  ;;  %3892 = vmatprep.subr.msk.bf16.mxu0 %vm97_vm1, %v4015_v6  ;;  %s3949_s13 = smov 50   ;;  %s3950_s14 = smov 44  }
   0x7   :  { %204 = vrot.lane.b32.xlu1 %v3998_v3, %s3937_s16  ;;  %3893 = vmatprep.subr.msk.bf16.mxu1 %vm97_vm1, %v4015_v6  ;;  %s3951_s15 = smov 38   ;;  %s3953_s17 = smov 26  }
   0x8   :  { %3533 = vmatmul.mubr.msk.bf16.vlgmr.msra.gmra.mrb[0].mxu0 %vm72_vm0, %v3990_v2  ;;  %s3954_s18 = smov 20   ;;  %s3955_s19 = smov 14  }
   0x9   :  { %3536 = vmatprep.mubr.msk.bf16.mxu0 %vm72_vm0, %v3984_v1  ;;  %3567 = vmatpush3.bf16.msra.mxu0 %v4021_v7 }
   0xa   :  { %206 = vrot.lane.b32.xlu0 %v4004_v4, %s3937_s16  ;;  %3894 = vmatprep.subr.msk.bf16.mxu0 %vm97_vm1, %v4015_v6 }
   0xb   :  { %208 = vrot.lane.b32.xlu1 %v4010_v5, %s3937_s16 }
   0xe   :  { %210 = vrot.lane.b32.xlu0 %v4029_v8, %s3937_s16 }
   0xf   :  { %212 = vrot.lane.b32.xlu1 %v4036_v9, %s3937_s16  ;;  %s3952_s16 = smov 32  }
  0x10   :  { %3537 = vmatmul.mubr.msk.bf16.gmra.mrb[4].mxu0 %vm72_vm0, %v3998_v3 }
  0x11   :  { %3540 = vmatprep.mubr.msk.bf16.mxu0 %vm72_vm0, %v4004_v4 }
  0x12   :  { %351 = vrot.lane.b32.xlu0 %v3979_v0, %s3938_s0 }
  0x13   :  { %353 = vrot.lane.b32.xlu1 %v3990_v2, %s3938_s0 }
  0x16   :  { %504 = vrot.lane.b32.xlu0 %v3979_v0, %s3939_s30 }
  0x17   :  { %506 = vrot.lane.b32.xlu1 %v3990_v2, %s3939_s30 }
  0x18   :  { %3541 = vmatmul.mubr.msk.bf16.gmra.mrb[8].mxu0 %vm72_vm0, %v4010_v5 }
  0x19   :  { %3544 = vmatprep.mubr.msk.bf16.mxu0 %vm72_vm0, %v4029_v8 }
  0x1a   :  { %355 = vrot.lane.b32.xlu0 %v3984_v1, %s3938_s0 }
  0x1b   :  { %357 = vrot.lane.b32.xlu1 %v3998_v3, %s3938_s0 }
  0x1e   :  { %508 = vrot.lane.b32.xlu0 %v3984_v1, %s3939_s30 }
  0x1f   :  { %510 = vrot.lane.b32.xlu1 %v3998_v3, %s3939_s30 }
  0x20   :  { %3545 = vmatmul.mubr.msk.bf16.gmra.mrb[12].mxu0 %vm72_vm0, %v4036_v9 }
  0x22   :  { %359 = vrot.lane.b32.xlu0 %v4004_v4, %s3938_s0 }
  0x23   :  { %361 = vrot.lane.b32.xlu1 %v4010_v5, %s3938_s0 }
  0x26   :  { %512 = vrot.lane.b32.xlu0 %v4004_v4, %s3939_s30 }
  0x27   :  { %514 = vrot.lane.b32.xlu1 %v4010_v5, %s3939_s30 }
  0x2a   :  { %363 = vrot.lane.b32.xlu0 %v4029_v8, %s3938_s0 }
  0x2b   :  { %365 = vrot.lane.b32.xlu1 %v4036_v9, %s3938_s0 }
  0x2e   :  { %516 = vrot.lane.b32.xlu0 %v4029_v8, %s3939_s30 }
  0x2f   :  { %518 = vrot.lane.b32.xlu1 %v4036_v9, %s3939_s30 }
  0x32   :  { %657 = vrot.lane.b32.xlu0 %v3979_v0, %s3940_s4 }
  0x33   :  { %659 = vrot.lane.b32.xlu1 %v3990_v2, %s3940_s4 }
  0x36   :  { %810 = vrot.lane.b32.xlu0 %v3979_v0, %s3941_s5 }
  0x37   :  { %812 = vrot.lane.b32.xlu1 %v3990_v2, %s3941_s5 }
  0x3a   :  { %661 = vrot.lane.b32.xlu0 %v3984_v1, %s3940_s4 }
  0x3b   :  { %663 = vrot.lane.b32.xlu1 %v3998_v3, %s3940_s4 }
  0x3e   :  { %814 = vrot.lane.b32.xlu0 %v3984_v1, %s3941_s5 }
  0x3f   :  { %816 = vrot.lane.b32.xlu1 %v3998_v3, %s3941_s5 }
  0x42   :  { %665 = vrot.lane.b32.xlu0 %v4004_v4, %s3940_s4 }
  0x43   :  { %667 = vrot.lane.b32.xlu1 %v4010_v5, %s3940_s4 }
  0x46   :  { %818 = vrot.lane.b32.xlu0 %v4004_v4, %s3941_s5 }
  0x47   :  { %820 = vrot.lane.b32.xlu1 %v4010_v5, %s3941_s5 }
  0x4a   :  { %669 = vrot.lane.b32.xlu0 %v4029_v8, %s3940_s4 }
  0x4b   :  { %671 = vrot.lane.b32.xlu1 %v4036_v9, %s3940_s4 }
  0x4e   :  { %822 = vrot.lane.b32.xlu0 %v4029_v8, %s3941_s5 }
  0x4f   :  { %824 = vrot.lane.b32.xlu1 %v4036_v9, %s3941_s5 }
  0x52   :  { %963 = vrot.lane.b32.xlu0 %v3979_v0, %s3942_s6 }
  0x53   :  { %965 = vrot.lane.b32.xlu1 %v3990_v2, %s3942_s6 }
  0x56   :  { %1116 = vrot.lane.b32.xlu0 %v3979_v0, %s3943_s7 }
  0x57   :  { %1118 = vrot.lane.b32.xlu1 %v3990_v2, %s3943_s7 }
  0x5a   :  { %967 = vrot.lane.b32.xlu0 %v3984_v1, %s3942_s6 }
  0x5b   :  { %969 = vrot.lane.b32.xlu1 %v3998_v3, %s3942_s6 }
  0x5e   :  { %1120 = vrot.lane.b32.xlu0 %v3984_v1, %s3943_s7 }
  0x5f   :  { %1122 = vrot.lane.b32.xlu1 %v3998_v3, %s3943_s7 }
  0x62   :  { %971 = vrot.lane.b32.xlu0 %v4004_v4, %s3942_s6 }
  0x63   :  { %973 = vrot.lane.b32.xlu1 %v4010_v5, %s3942_s6 }
  0x66   :  { %1124 = vrot.lane.b32.xlu0 %v4004_v4, %s3943_s7 }
  0x67   :  { %1126 = vrot.lane.b32.xlu1 %v4010_v5, %s3943_s7 }
  0x6a   :  { %975 = vrot.lane.b32.xlu0 %v4029_v8, %s3942_s6 }
  0x6b   :  { %977 = vrot.lane.b32.xlu1 %v4036_v9, %s3942_s6 }
  0x6e   :  { %1128 = vrot.lane.b32.xlu0 %v4029_v8, %s3943_s7 }
  0x6f   :  { %1130 = vrot.lane.b32.xlu1 %v4036_v9, %s3943_s7 }
  0x72   :  { %1269 = vrot.lane.b32.xlu0 %v3979_v0, %s3944_s8 }
  0x73   :  { %1271 = vrot.lane.b32.xlu1 %v3990_v2, %s3944_s8 }
  0x74   :  { %v199_v10 = vpop.permute.xlu0 %198 }
  0x75   :  { %v203_v11 = vpop.permute.xlu1 %202  ;;  %3550 = vmatprep.mubr.msk.bf16.mxu1 %vm72_vm0, %v199_v10 }
  0x76   :  { %1422 = vrot.lane.b32.xlu0 %v3979_v0, %s3945_s9 }
  0x77   :  { %1424 = vrot.lane.b32.xlu1 %v3990_v2, %s3945_s9 }
  0x78   :  { %v201_v12 = vpop.permute.xlu0 %200 }
  0x79   :  { %v205_v13 = vpop.permute.xlu1 %204  ;;  %3551 = vmatmul.mubr.msk.bf16.vlgmr.msra.gmra.mrb[0].mxu1 %vm72_vm0, %v201_v12 }
  0x7a   :  { %3585 = vmatpush3.bf16.msra.mxu1 %v4021_v7  ;;  %1273 = vrot.lane.b32.xlu0 %v3984_v1, %s3944_s8 }
  0x7b   :  { %1275 = vrot.lane.b32.xlu1 %v3998_v3, %s3944_s8  ;;  %3554 = vmatprep.mubr.msk.bf16.mxu1 %vm72_vm0, %v203_v11 }
  0x7c   :  { %v207_v14 = vpop.permute.xlu0 %206  ;;  %3895 = vmatprep.subr.msk.bf16.mxu1 %vm97_vm1, %v4015_v6 }
  0x7d   :  { %v209_v15 = vpop.permute.xlu1 %208 }
  0x7e   :  { %1426 = vrot.lane.b32.xlu0 %v3984_v1, %s3945_s9 }
  0x7f   :  { %1428 = vrot.lane.b32.xlu1 %v3998_v3, %s3945_s9 }
  0x80   :  { %v211_v16 = vpop.permute.xlu0 %210 }
  0x81   :  { %v213_v17 = vpop.permute.xlu1 %212  ;;  %3555 = vmatmul.mubr.msk.bf16.gmra.mrb[4].mxu1 %vm72_vm0, %v205_v13 }
  0x82   :  { %1277 = vrot.lane.b32.xlu0 %v4004_v4, %s3944_s8  ;;  %3558 = vmatprep.mubr.msk.bf16.mxu1 %vm72_vm0, %v207_v14 }
  0x83   :  { %1279 = vrot.lane.b32.xlu1 %v4010_v5, %s3944_s8 }
  0x84   :  { %v352_v18 = vpop.permute.xlu0 %351 }
  0x85   :  { %v354_v19 = vpop.permute.xlu1 %353  ;;  %3568 = vmatprep.mubr.msk.bf16.mxu0 %vm72_vm0, %v352_v18 }
  0x86   :  { %1430 = vrot.lane.b32.xlu0 %v4004_v4, %s3945_s9  ;;  %3569 = vmatmul.mubr.msk.bf16.vlgmr.msra.gmra.mrb[16].mxu0 %vm72_vm0, %v354_v19 }
  0x87   :  { %1432 = vrot.lane.b32.xlu1 %v4010_v5, %s3945_s9  ;;  %3603 = vmatpush3.bf16.msra.mxu0 %v4021_v7 }
  0x88   :  { %v505_v20 = vpop.permute.xlu0 %504  ;;  %3896 = vmatprep.subr.msk.bf16.mxu0 %vm97_vm1, %v4015_v6 }
  0x89   :  { %v507_v21 = vpop.permute.xlu1 %506  ;;  %3559 = vmatmul.mubr.msk.bf16.gmra.mrb[8].mxu1 %vm72_vm0, %v209_v15 }
  0x8a   :  { %1281 = vrot.lane.b32.xlu0 %v4029_v8, %s3944_s8  ;;  %3562 = vmatprep.mubr.msk.bf16.mxu1 %vm72_vm0, %v211_v16 }
  0x8b   :  { %1283 = vrot.lane.b32.xlu1 %v4036_v9, %s3944_s8 }
  0x8c   :  { %v356_v22 = vpop.permute.xlu0 %355 }
  0x8d   :  { %v358_v23 = vpop.permute.xlu1 %357  ;;  %3572 = vmatprep.mubr.msk.bf16.mxu0 %vm72_vm0, %v356_v22 }
  0x8e   :  { %1434 = vrot.lane.b32.xlu0 %v4029_v8, %s3945_s9  ;;  %3573 = vmatmul.mubr.msk.bf16.gmra.mrb[20].mxu0 %vm72_vm0, %v358_v23 }
  0x8f   :  { %1436 = vrot.lane.b32.xlu1 %v4036_v9, %s3945_s9 }
  0x90   :  { %v509_v24 = vpop.permute.xlu0 %508 }
  0x91   :  { %v511_v25 = vpop.permute.xlu1 %510  ;;  %3563 = vmatmul.mubr.msk.bf16.gmra.mrb[12].mxu1 %vm72_vm0, %v213_v17 }
  0x92   :  { %1575 = vrot.lane.b32.xlu0 %v3979_v0, %s3946_s10  ;;  %3586 = vmatprep.mubr.msk.bf16.mxu1 %vm72_vm0, %v505_v20 }
  0x93   :  { %1577 = vrot.lane.b32.xlu1 %v3990_v2, %s3946_s10 }
  0x94   :  { %v360_v26 = vpop.permute.xlu0 %359 }
  0x95   :  { %v362_v27 = vpop.permute.xlu1 %361  ;;  %3576 = vmatprep.mubr.msk.bf16.mxu0 %vm72_vm0, %v360_v26 }
  0x96   :  { %1728 = vrot.lane.b32.xlu0 %v3979_v0, %s3947_s11  ;;  %3577 = vmatmul.mubr.msk.bf16.gmra.mrb[24].mxu0 %vm72_vm0, %v362_v27 }
  0x97   :  { %1730 = vrot.lane.b32.xlu1 %v3990_v2, %s3947_s11 }
  0x98   :  { %v513_v28 = vpop.permute.xlu0 %512 }
  0x99   :  { %v515_v29 = vpop.permute.xlu1 %514  ;;  %3587 = vmatmul.mubr.msk.bf16.vlgmr.msra.gmra.mrb[16].mxu1 %vm72_vm0, %v507_v21 }
  0x9a   :  { %3621 = vmatpush3.bf16.msra.mxu1 %v4021_v7  ;;  %1579 = vrot.lane.b32.xlu0 %v3984_v1, %s3946_s10 }
  0x9b   :  { %1581 = vrot.lane.b32.xlu1 %v3998_v3, %s3946_s10  ;;  %3590 = vmatprep.mubr.msk.bf16.mxu1 %vm72_vm0, %v509_v24 }
  0x9c   :  { %v364_v30 = vpop.permute.xlu0 %363  ;;  %3897 = vmatprep.subr.msk.bf16.mxu1 %vm97_vm1, %v4015_v6 }
  0x9d   :  { %v366_v31 = vpop.permute.xlu1 %365  ;;  %3580 = vmatprep.mubr.msk.bf16.mxu0 %vm72_vm0, %v364_v30 }
  0x9e   :  { %1732 = vrot.lane.b32.xlu0 %v3984_v1, %s3947_s11  ;;  %3581 = vmatmul.mubr.msk.bf16.gmra.mrb[28].mxu0 %vm72_vm0, %v366_v31 }
  0x9f   :  { %1734 = vrot.lane.b32.xlu1 %v3998_v3, %s3947_s11 }
  0xa0   :  { %v517_v32 = vpop.permute.xlu0 %516 }
  0xa1   :  { %v519_v33 = vpop.permute.xlu1 %518  ;;  %3591 = vmatmul.mubr.msk.bf16.gmra.mrb[20].mxu1 %vm72_vm0, %v511_v25 }
  0xa2   :  { %1583 = vrot.lane.b32.xlu0 %v4004_v4, %s3946_s10  ;;  %3594 = vmatprep.mubr.msk.bf16.mxu1 %vm72_vm0, %v513_v28 }
  0xa3   :  { %1585 = vrot.lane.b32.xlu1 %v4010_v5, %s3946_s10 }
  0xa4   :  { %v658_v34 = vpop.permute.xlu0 %657 }
  0xa5   :  { %v660_v35 = vpop.permute.xlu1 %659  ;;  %3604 = vmatprep.mubr.msk.bf16.mxu0 %vm72_vm0, %v658_v34 }
  0xa6   :  { %1736 = vrot.lane.b32.xlu0 %v4004_v4, %s3947_s11  ;;  %3605 = vmatmul.mubr.msk.bf16.vlgmr.msra.gmra.mrb[32].mxu0 %vm72_vm0, %v660_v35 }
  0xa7   :  { %1738 = vrot.lane.b32.xlu1 %v4010_v5, %s3947_s11  ;;  %3639 = vmatpush3.bf16.msra.mxu0 %v4021_v7 }
  0xa8   :  { %v811_v36 = vpop.permute.xlu0 %810  ;;  %3898 = vmatprep.subr.msk.bf16.mxu0 %vm97_vm1, %v4015_v6 }
  0xa9   :  { %v813_v37 = vpop.permute.xlu1 %812  ;;  %3595 = vmatmul.mubr.msk.bf16.gmra.mrb[24].mxu1 %vm72_vm0, %v515_v29 }
  0xaa   :  { %1587 = vrot.lane.b32.xlu0 %v4029_v8, %s3946_s10  ;;  %3598 = vmatprep.mubr.msk.bf16.mxu1 %vm72_vm0, %v517_v32 }
  0xab   :  { %1589 = vrot.lane.b32.xlu1 %v4036_v9, %s3946_s10 }
  0xac   :  { %v662_v38 = vpop.permute.xlu0 %661 }
  0xad   :  { %v664_v39 = vpop.permute.xlu1 %663  ;;  %3608 = vmatprep.mubr.msk.bf16.mxu0 %vm72_vm0, %v662_v38 }
  0xae   :  { %1740 = vrot.lane.b32.xlu0 %v4029_v8, %s3947_s11  ;;  %3609 = vmatmul.mubr.msk.bf16.gmra.mrb[36].mxu0 %vm72_vm0, %v664_v39 }
  0xaf   :  { %1742 = vrot.lane.b32.xlu1 %v4036_v9, %s3947_s11 }
  0xb0   :  { %v815_v40 = vpop.permute.xlu0 %814 }
  0xb1   :  { %v817_v41 = vpop.permute.xlu1 %816  ;;  %3599 = vmatmul.mubr.msk.bf16.gmra.mrb[28].mxu1 %vm72_vm0, %v519_v33 }
  0xb2   :  { %1881 = vrot.lane.b32.xlu0 %v3979_v0, %s3948_s12  ;;  %3622 = vmatprep.mubr.msk.bf16.mxu1 %vm72_vm0, %v811_v36 }
  0xb3   :  { %1883 = vrot.lane.b32.xlu1 %v3990_v2, %s3948_s12 }
  0xb4   :  { %v666_v42 = vpop.permute.xlu0 %665 }
  0xb5   :  { %v668_v43 = vpop.permute.xlu1 %667  ;;  %3612 = vmatprep.mubr.msk.bf16.mxu0 %vm72_vm0, %v666_v42 }
  0xb6   :  { %2034 = vrot.lane.b32.xlu0 %v3979_v0, %s3949_s13  ;;  %3613 = vmatmul.mubr.msk.bf16.gmra.mrb[40].mxu0 %vm72_vm0, %v668_v43 }
  0xb7   :  { %2036 = vrot.lane.b32.xlu1 %v3990_v2, %s3949_s13 }
  0xb8   :  { %v819_v44 = vpop.permute.xlu0 %818 }
  0xb9   :  { %v821_v45 = vpop.permute.xlu1 %820  ;;  %3623 = vmatmul.mubr.msk.bf16.vlgmr.msra.gmra.mrb[32].mxu1 %vm72_vm0, %v813_v37 }
  0xba   :  { %3657 = vmatpush3.bf16.msra.mxu1 %v4021_v7  ;;  %1885 = vrot.lane.b32.xlu0 %v3984_v1, %s3948_s12 }
  0xbb   :  { %1887 = vrot.lane.b32.xlu1 %v3998_v3, %s3948_s12  ;;  %3626 = vmatprep.mubr.msk.bf16.mxu1 %vm72_vm0, %v815_v40 }
  0xbc   :  { %v670_v46 = vpop.permute.xlu0 %669  ;;  %3899 = vmatprep.subr.msk.bf16.mxu1 %vm97_vm1, %v4015_v6 }
  0xbd   :  { %v672_v47 = vpop.permute.xlu1 %671  ;;  %3616 = vmatprep.mubr.msk.bf16.mxu0 %vm72_vm0, %v670_v46 }
  0xbe   :  { %2038 = vrot.lane.b32.xlu0 %v3984_v1, %s3949_s13  ;;  %3617 = vmatmul.mubr.msk.bf16.gmra.mrb[44].mxu0 %vm72_vm0, %v672_v47 }
  0xbf   :  { %2040 = vrot.lane.b32.xlu1 %v3998_v3, %s3949_s13 }
  0xc0   :  { %v823_v48 = vpop.permute.xlu0 %822 }
  0xc1   :  { %v825_v49 = vpop.permute.xlu1 %824  ;;  %3627 = vmatmul.mubr.msk.bf16.gmra.mrb[36].mxu1 %vm72_vm0, %v817_v41 }
  0xc2   :  { %1889 = vrot.lane.b32.xlu0 %v4004_v4, %s3948_s12  ;;  %3630 = vmatprep.mubr.msk.bf16.mxu1 %vm72_vm0, %v819_v44 }
  0xc3   :  { %1891 = vrot.lane.b32.xlu1 %v4010_v5, %s3948_s12 }
  0xc4   :  { %v964_v50 = vpop.permute.xlu0 %963 }
  0xc5   :  { %v966_v51 = vpop.permute.xlu1 %965  ;;  %3640 = vmatprep.mubr.msk.bf16.mxu0 %vm72_vm0, %v964_v50 }
  0xc6   :  { %2042 = vrot.lane.b32.xlu0 %v4004_v4, %s3949_s13  ;;  %3641 = vmatmul.mubr.msk.bf16.vlgmr.msra.gmra.mrb[48].mxu0 %vm72_vm0, %v966_v51 }
  0xc7   :  { %2044 = vrot.lane.b32.xlu1 %v4010_v5, %s3949_s13  ;;  %3675 = vmatpush3.bf16.msra.mxu0 %v4021_v7 }
  0xc8   :  { %v1117_v52 = vpop.permute.xlu0 %1116  ;;  %3900 = vmatprep.subr.msk.bf16.mxu0 %vm97_vm1, %v4015_v6 }
  0xc9   :  { %v1119_v53 = vpop.permute.xlu1 %1118  ;;  %3631 = vmatmul.mubr.msk.bf16.gmra.mrb[40].mxu1 %vm72_vm0, %v821_v45 }
  0xca   :  { %1893 = vrot.lane.b32.xlu0 %v4029_v8, %s3948_s12  ;;  %3634 = vmatprep.mubr.msk.bf16.mxu1 %vm72_vm0, %v823_v48 }
  0xcb   :  { %1895 = vrot.lane.b32.xlu1 %v4036_v9, %s3948_s12 }
  0xcc   :  { %v968_v54 = vpop.permute.xlu0 %967 }
  0xcd   :  { %v970_v55 = vpop.permute.xlu1 %969  ;;  %3644 = vmatprep.mubr.msk.bf16.mxu0 %vm72_vm0, %v968_v54 }
  0xce   :  { %2046 = vrot.lane.b32.xlu0 %v4029_v8, %s3949_s13  ;;  %3645 = vmatmul.mubr.msk.bf16.gmra.mrb[52].mxu0 %vm72_vm0, %v970_v55 }
  0xcf   :  { %2048 = vrot.lane.b32.xlu1 %v4036_v9, %s3949_s13 }
  0xd0   :  { %v1121_v56 = vpop.permute.xlu0 %1120 }
  0xd1   :  { %v1123_v57 = vpop.permute.xlu1 %1122  ;;  %3635 = vmatmul.mubr.msk.bf16.gmra.mrb[44].mxu1 %vm72_vm0, %v825_v49 }
  0xd2   :  { %2187 = vrot.lane.b32.xlu0 %v3979_v0, %s3950_s14  ;;  %3658 = vmatprep.mubr.msk.bf16.mxu1 %vm72_vm0, %v1117_v52 }
  0xd3   :  { %2189 = vrot.lane.b32.xlu1 %v3990_v2, %s3950_s14 }
  0xd4   :  { %v972_v58 = vpop.permute.xlu0 %971 }
  0xd5   :  { %v974_v59 = vpop.permute.xlu1 %973  ;;  %3648 = vmatprep.mubr.msk.bf16.mxu0 %vm72_vm0, %v972_v58 }
  0xd6   :  { %2340 = vrot.lane.b32.xlu0 %v3979_v0, %s3951_s15  ;;  %3649 = vmatmul.mubr.msk.bf16.gmra.mrb[56].mxu0 %vm72_vm0, %v974_v59 }
  0xd7   :  { %2342 = vrot.lane.b32.xlu1 %v3990_v2, %s3951_s15 }
  0xd8   :  { %v1125_v60 = vpop.permute.xlu0 %1124 }
  0xd9   :  { %v1127_v61 = vpop.permute.xlu1 %1126  ;;  %3659 = vmatmul.mubr.msk.bf16.vlgmr.msra.gmra.mrb[48].mxu1 %vm72_vm0, %v1119_v53 }
  0xda   :  { %3693 = vmatpush3.bf16.msra.mxu1 %v4021_v7  ;;  %2191 = vrot.lane.b32.xlu0 %v3984_v1, %s3950_s14 }
  0xdb   :  { %2193 = vrot.lane.b32.xlu1 %v3998_v3, %s3950_s14  ;;  %3662 = vmatprep.mubr.msk.bf16.mxu1 %vm72_vm0, %v1121_v56  ;;  %v4294_v11 = vpop.f32.mrb[0].mxu0 }
  0xdc   :  { %v976_v62 = vpop.permute.xlu0 %975  ;;  %3901 = vmatprep.subr.msk.bf16.mxu1 %vm97_vm1, %v4015_v6  ;;  %v4297_v13 = vpop.f32.mrb[1].mxu0 }
  0xdd   :  { %v978_v63 = vpop.permute.xlu1 %977  ;;  %3652 = vmatprep.mubr.msk.bf16.mxu0 %vm72_vm0, %v976_v62  ;;  %v4302_v14 = vpop.f32.mrb[2].mxu0 }
  0xde   :  { %2344 = vrot.lane.b32.xlu0 %v3984_v1, %s3951_s15  ;;  %3653 = vmatmul.mubr.msk.bf16.gmra.mrb[60].mxu0 %vm72_vm0, %v978_v63  ;;  %v4306_v15 = vpop.f32.mrb[3].mxu0 }
  0xdf   :  { %2346 = vrot.lane.b32.xlu1 %v3998_v3, %s3951_s15 }
  0xe0   :  { %v1129_v10 = vpop.permute.xlu0 %1128 }
  0xe1   :  { %v1131_v12 = vpop.permute.xlu1 %1130  ;;  %3663 = vmatmul.mubr.msk.bf16.gmra.mrb[52].mxu1 %vm72_vm0, %v1123_v57 }
  0xe2   :  { %2195 = vrot.lane.b32.xlu0 %v4004_v4, %s3950_s14  ;;  %3666 = vmatprep.mubr.msk.bf16.mxu1 %vm72_vm0, %v1125_v60 }
  0xe3   :  { %2197 = vrot.lane.b32.xlu1 %v4010_v5, %s3950_s14  ;;  %v4317_v19 = vpop.f32.mrb[4].mxu0 }
  0xe4   :  { %v1270_v16 = vpop.permute.xlu0 %1269  ;;  %v4320_v21 = vpop.f32.mrb[5].mxu0 }
  0xe5   :  { %v1272_v17 = vpop.permute.xlu1 %1271  ;;  %3676 = vmatprep.mubr.msk.bf16.mxu0 %vm72_vm0, %v1270_v16  ;;  %v4325_v22 = vpop.f32.mrb[6].mxu0 }
  0xe6   :  { %2348 = vrot.lane.b32.xlu0 %v4004_v4, %s3951_s15  ;;  %3677 = vmatmul.mubr.msk.bf16.vlgmr.msra.gmra.mrb[64].mxu0 %vm72_vm0, %v1272_v17  ;;  %v4329_v23 = vpop.f32.mrb[7].mxu0 }
  0xe7   :  { %2350 = vrot.lane.b32.xlu1 %v4010_v5, %s3951_s15  ;;  %3711 = vmatpush3.bf16.msra.mxu0 %v4021_v7 }
  0xe8   :  { %v1423_v18 = vpop.permute.xlu0 %1422  ;;  %3902 = vmatprep.subr.msk.bf16.mxu0 %vm97_vm1, %v4015_v6 }
  0xe9   :  { %v1425_v20 = vpop.permute.xlu1 %1424  ;;  %3667 = vmatmul.mubr.msk.bf16.gmra.mrb[56].mxu1 %vm72_vm0, %v1127_v61 }
  0xea   :  { %2199 = vrot.lane.b32.xlu0 %v4029_v8, %s3950_s14  ;;  %3670 = vmatprep.mubr.msk.bf16.mxu1 %vm72_vm0, %v1129_v10 }
  0xeb   :  { %2201 = vrot.lane.b32.xlu1 %v4036_v9, %s3950_s14  ;;  %v4337_v27 = vpop.f32.mrb[8].mxu0 }
  0xec   :  { %v1274_v24 = vpop.permute.xlu0 %1273  ;;  %v4340_v29 = vpop.f32.mrb[9].mxu0 }
  0xed   :  { %v1276_v25 = vpop.permute.xlu1 %1275  ;;  %3680 = vmatprep.mubr.msk.bf16.mxu0 %vm72_vm0, %v1274_v24  ;;  %v4345_v30 = vpop.f32.mrb[10].mxu0 }
  0xee   :  { %2352 = vrot.lane.b32.xlu0 %v4029_v8, %s3951_s15  ;;  %3681 = vmatmul.mubr.msk.bf16.gmra.mrb[68].mxu0 %vm72_vm0, %v1276_v25  ;;  %v4349_v31 = vpop.f32.mrb[11].mxu0 }
  0xef   :  { %2354 = vrot.lane.b32.xlu1 %v4036_v9, %s3951_s15 }
  0xf0   :  { %v1427_v26 = vpop.permute.xlu0 %1426 }
  0xf1   :  { %v1429_v28 = vpop.permute.xlu1 %1428  ;;  %3671 = vmatmul.mubr.msk.bf16.gmra.mrb[60].mxu1 %vm72_vm0, %v1131_v12 }
  0xf2   :  { %2493 = vrot.lane.b32.xlu0 %v3979_v0, %s3952_s16  ;;  %3694 = vmatprep.mubr.msk.bf16.mxu1 %vm72_vm0, %v1423_v18 }
  0xf3   :  { %2495 = vrot.lane.b32.xlu1 %v3990_v2, %s3952_s16  ;;  %v4357_v35 = vpop.f32.mrb[12].mxu0 }
  0xf4   :  { %v1278_v32 = vpop.permute.xlu0 %1277  ;;  %v4360_v37 = vpop.f32.mrb[13].mxu0 }
  0xf5   :  { %v1280_v33 = vpop.permute.xlu1 %1279  ;;  %3684 = vmatprep.mubr.msk.bf16.mxu0 %vm72_vm0, %v1278_v32  ;;  %v4365_v38 = vpop.f32.mrb[14].mxu0 }
  0xf6   :  { %2646 = vrot.lane.b32.xlu0 %v3979_v0, %s3953_s17  ;;  %3685 = vmatmul.mubr.msk.bf16.gmra.mrb[72].mxu0 %vm72_vm0, %v1280_v33  ;;  %v4370_v39 = vpop.f32.mrb[15].mxu0 }
  0xf7   :  { %2648 = vrot.lane.b32.xlu1 %v3990_v2, %s3953_s17 }
  0xf8   :  { %v1431_v34 = vpop.permute.xlu0 %1430 }
  0xf9   :  { %v1433_v36 = vpop.permute.xlu1 %1432  ;;  %3695 = vmatmul.mubr.msk.bf16.vlgmr.msra.gmra.mrb[64].mxu1 %vm72_vm0, %v1425_v20 }
  0xfa   :  { %3729 = vmatpush3.bf16.msra.mxu1 %v4021_v7  ;;  %2497 = vrot.lane.b32.xlu0 %v3984_v1, %s3952_s16 }
  0xfb   :  { %2499 = vrot.lane.b32.xlu1 %v3998_v3, %s3952_s16  ;;  %3698 = vmatprep.mubr.msk.bf16.mxu1 %vm72_vm0, %v1427_v26 }
  0xfc   :  { %v1282_v40 = vpop.permute.xlu0 %1281  ;;  %3903 = vmatprep.subr.msk.bf16.mxu1 %vm97_vm1, %v4015_v6 }
  0xfd   :  { %v1284_v41 = vpop.permute.xlu1 %1283  ;;  %3688 = vmatprep.mubr.msk.bf16.mxu0 %vm72_vm0, %v1282_v40 }
  0xfe   :  { %2650 = vrot.lane.b32.xlu0 %v3984_v1, %s3953_s17  ;;  %3689 = vmatmul.mubr.msk.bf16.gmra.mrb[76].mxu0 %vm72_vm0, %v1284_v41 }
  0xff   :  { %2652 = vrot.lane.b32.xlu1 %v3998_v3, %s3953_s17 }
 0x100   :  { %v1435_v42 = vpop.permute.xlu0 %1434 }
 0x101   :  { %v1437_v43 = vpop.permute.xlu1 %1436  ;;  %3699 = vmatmul.mubr.msk.bf16.gmra.mrb[68].mxu1 %vm72_vm0, %v1429_v28 }
 0x102   :  { %2501 = vrot.lane.b32.xlu0 %v4004_v4, %s3952_s16  ;;  %3702 = vmatprep.mubr.msk.bf16.mxu1 %vm72_vm0, %v1431_v34 }
 0x103   :  { %2503 = vrot.lane.b32.xlu1 %v4010_v5, %s3952_s16 }
 0x104   :  { %v1576_v44 = vpop.permute.xlu0 %1575 }
 0x105   :  { %v1578_v45 = vpop.permute.xlu1 %1577  ;;  %3712 = vmatprep.mubr.msk.bf16.mxu0 %vm72_vm0, %v1576_v44 }
 0x106   :  { %2654 = vrot.lane.b32.xlu0 %v4004_v4, %s3953_s17  ;;  %3713 = vmatmul.mubr.msk.bf16.vlgmr.msra.gmra.mrb[80].mxu0 %vm72_vm0, %v1578_v45 }
 0x107   :  { %2656 = vrot.lane.b32.xlu1 %v4010_v5, %s3953_s17  ;;  %3747 = vmatpush3.bf16.msra.mxu0 %v4021_v7 }
 0x108   :  { %v1729_v46 = vpop.permute.xlu0 %1728  ;;  %3904 = vmatprep.subr.msk.bf16.mxu0 %vm97_vm1, %v4015_v6 }
 0x109   :  { %v1731_v47 = vpop.permute.xlu1 %1730  ;;  %3703 = vmatmul.mubr.msk.bf16.gmra.mrb[72].mxu1 %vm72_vm0, %v1433_v36 }
 0x10a   :  { %2505 = vrot.lane.b32.xlu0 %v4029_v8, %s3952_s16  ;;  %3706 = vmatprep.mubr.msk.bf16.mxu1 %vm72_vm0, %v1435_v42 }
 0x10b   :  { %2507 = vrot.lane.b32.xlu1 %v4036_v9, %s3952_s16 }
 0x10c   :  { %v1580_v48 = vpop.permute.xlu0 %1579 }
 0x10d   :  { %v1582_v49 = vpop.permute.xlu1 %1581  ;;  %3716 = vmatprep.mubr.msk.bf16.mxu0 %vm72_vm0, %v1580_v48 }
 0x10e   :  { %2658 = vrot.lane.b32.xlu0 %v4029_v8, %s3953_s17  ;;  %3717 = vmatmul.mubr.msk.bf16.gmra.mrb[84].mxu0 %vm72_vm0, %v1582_v49 }
 0x10f   :  { %2660 = vrot.lane.b32.xlu1 %v4036_v9, %s3953_s17 }
 0x110   :  { %v1733_v50 = vpop.permute.xlu0 %1732 }
 0x111   :  { %v1735_v51 = vpop.permute.xlu1 %1734  ;;  %3707 = vmatmul.mubr.msk.bf16.gmra.mrb[76].mxu1 %vm72_vm0, %v1437_v43 }
 0x112   :  { %2799 = vrot.lane.b32.xlu0 %v3979_v0, %s3954_s18  ;;  %3730 = vmatprep.mubr.msk.bf16.mxu1 %vm72_vm0, %v1729_v46 }
 0x113   :  { %2801 = vrot.lane.b32.xlu1 %v3990_v2, %s3954_s18 }
 0x114   :  { %v1584_v52 = vpop.permute.xlu0 %1583 }
 0x115   :  { %v1586_v53 = vpop.permute.xlu1 %1585  ;;  %3720 = vmatprep.mubr.msk.bf16.mxu0 %vm72_vm0, %v1584_v52 }
 0x116   :  { %2952 = vrot.lane.b32.xlu0 %v3979_v0, %s3955_s19  ;;  %3721 = vmatmul.mubr.msk.bf16.gmra.mrb[88].mxu0 %vm72_vm0, %v1586_v53 }
 0x117   :  { %2954 = vrot.lane.b32.xlu1 %v3990_v2, %s3955_s19 }
 0x118   :  { %v1737_v54 = vpop.permute.xlu0 %1736 }
 0x119   :  { %v1739_v55 = vpop.permute.xlu1 %1738  ;;  %3731 = vmatmul.mubr.msk.bf16.vlgmr.msra.gmra.mrb[80].mxu1 %vm72_vm0, %v1731_v47 }
 0x11a   :  { %3765 = vmatpush3.bf16.msra.mxu1 %v4021_v7  ;;  %2803 = vrot.lane.b32.xlu0 %v3984_v1, %s3954_s18 }
 0x11b   :  { %2805 = vrot.lane.b32.xlu1 %v3998_v3, %s3954_s18  ;;  %3734 = vmatprep.mubr.msk.bf16.mxu1 %vm72_vm0, %v1733_v50 }
 0x11c   :  { %v1588_v0 = vpop.permute.xlu0 %1587  ;;  %3905 = vmatprep.subr.msk.bf16.mxu1 %vm97_vm1, %v4015_v6 }
 0x11d   :  { %v1590_v56 = vpop.permute.xlu1 %1589  ;;  %3724 = vmatprep.mubr.msk.bf16.mxu0 %vm72_vm0, %v1588_v0 }
 0x11e   :  { %2956 = vrot.lane.b32.xlu0 %v3984_v1, %s3955_s19  ;;  %3725 = vmatmul.mubr.msk.bf16.gmra.mrb[92].mxu0 %vm72_vm0, %v1590_v56 }
 0x11f   :  { %2958 = vrot.lane.b32.xlu1 %v3998_v3, %s3955_s19 }
 0x120   :  { %v1741_v2 = vpop.permute.xlu0 %1740 }
 0x121   :  { %v1743_v57 = vpop.permute.xlu1 %1742  ;;  %3735 = vmatmul.mubr.msk.bf16.gmra.mrb[84].mxu1 %vm72_vm0, %v1735_v51 }
 0x122   :  { %2807 = vrot.lane.b32.xlu0 %v4004_v4, %s3954_s18  ;;  %3738 = vmatprep.mubr.msk.bf16.mxu1 %vm72_vm0, %v1737_v54 }
 0x123   :  { %2809 = vrot.lane.b32.xlu1 %v4010_v5, %s3954_s18 }
 0x124   :  { %v1882_v58 = vpop.permute.xlu0 %1881 }
 0x125   :  { %v1884_v59 = vpop.permute.xlu1 %1883  ;;  %3748 = vmatprep.mubr.msk.bf16.mxu0 %vm72_vm0, %v1882_v58 }
 0x126   :  { %2960 = vrot.lane.b32.xlu0 %v4004_v4, %s3955_s19  ;;  %3749 = vmatmul.mubr.msk.bf16.vlgmr.msra.gmra.mrb[96].mxu0 %vm72_vm0, %v1884_v59 }
 0x127   :  { %2962 = vrot.lane.b32.xlu1 %v4010_v5, %s3955_s19  ;;  %3783 = vmatpush3.bf16.msra.mxu0 %v4021_v7 }
 0x128   :  { %v2035_v1 = vpop.permute.xlu0 %2034  ;;  %3906 = vmatprep.subr.msk.bf16.mxu0 %vm97_vm1, %v4015_v6 }
 0x129   :  { %v2037_v3 = vpop.permute.xlu1 %2036  ;;  %3739 = vmatmul.mubr.msk.bf16.gmra.mrb[88].mxu1 %vm72_vm0, %v1739_v55 }
 0x12a   :  { %2811 = vrot.lane.b32.xlu0 %v4029_v8, %s3954_s18  ;;  %3742 = vmatprep.mubr.msk.bf16.mxu1 %vm72_vm0, %v1741_v2 }
 0x12b   :  { %2813 = vrot.lane.b32.xlu1 %v4036_v9, %s3954_s18 }
 0x12c   :  { %v1886_v4 = vpop.permute.xlu0 %1885 }
 0x12d   :  { %v1888_v60 = vpop.permute.xlu1 %1887  ;;  %3752 = vmatprep.mubr.msk.bf16.mxu0 %vm72_vm0, %v1886_v4 }
 0x12e   :  { %3753 = vmatmul.mubr.msk.bf16.gmra.mrb[100].mxu0 %vm72_vm0, %v1888_v60  ;;  %2964 = vrot.lane.b32.xlu0 %v4029_v8, %s3955_s19 }
 0x12f   :  { %2966 = vrot.lane.b32.xlu1 %v4036_v9, %s3955_s19 }
 0x130   :  { %v2039_v5 = vpop.permute.xlu0 %2038 }
 0x131   :  { %v2041_v61 = vpop.permute.xlu1 %2040  ;;  %3743 = vmatmul.mubr.msk.bf16.gmra.mrb[92].mxu1 %vm72_vm0, %v1743_v57 }
 0x132   :  { %3766 = vmatprep.mubr.msk.bf16.mxu1 %vm72_vm0, %v2035_v1 }
 0x134   :  { %v1890_v62 = vpop.permute.xlu0 %1889 }
 0x135   :  { %v1892_v63 = vpop.permute.xlu1 %1891  ;;  %3756 = vmatprep.mubr.msk.bf16.mxu0 %vm72_vm0, %v1890_v62 }
 0x136   :  { %3757 = vmatmul.mubr.msk.bf16.gmra.mrb[104].mxu0 %vm72_vm0, %v1892_v63 }
 0x138   :  { %v2043_v10 = vpop.permute.xlu0 %2042 }
 0x139   :  { %v2045_v12 = vpop.permute.xlu1 %2044  ;;  %3767 = vmatmul.mubr.msk.bf16.vlgmr.msra.gmra.mrb[96].mxu1 %vm72_vm0, %v2037_v3 }
 0x13a   :  { %3801 = vmatpush3.bf16.msra.mxu1 %v4021_v7  ;;  %3770 = vmatprep.mubr.msk.bf16.mxu1 %vm72_vm0, %v2039_v5 }
 0x13b   :  { %3907 = vmatprep.subr.msk.bf16.mxu1 %vm97_vm1, %v4015_v6 }
 0x13c   :  { %v1894_v8 = vpop.permute.xlu0 %1893 }
 0x13d   :  { %v1896_v9 = vpop.permute.xlu1 %1895  ;;  %3760 = vmatprep.mubr.msk.bf16.mxu0 %vm72_vm0, %v1894_v8 }
 0x13e   :  { %3761 = vmatmul.mubr.msk.bf16.gmra.mrb[108].mxu0 %vm72_vm0, %v1896_v9 }
 0x140   :  { %v2047_v16 = vpop.permute.xlu0 %2046 }
 0x141   :  { %v2049_v17 = vpop.permute.xlu1 %2048  ;;  %3771 = vmatmul.mubr.msk.bf16.gmra.mrb[100].mxu1 %vm72_vm0, %v2041_v61 }
 0x142   :  { %3774 = vmatprep.mubr.msk.bf16.mxu1 %vm72_vm0, %v2043_v10 }
 0x144   :  { %v2188_v18 = vpop.permute.xlu0 %2187 }
 0x145   :  { %v2190_v20 = vpop.permute.xlu1 %2189  ;;  %3784 = vmatprep.mubr.msk.bf16.mxu0 %vm72_vm0, %v2188_v18 }
 0x146   :  { %3785 = vmatmul.mubr.msk.bf16.vlgmr.msra.gmra.mrb[112].mxu0 %vm72_vm0, %v2190_v20 }
 0x147   :  { %3819 = vmatpush3.bf16.msra.mxu0 %v4021_v7 }
 0x148   :  { %v2341_v24 = vpop.permute.xlu0 %2340  ;;  %3908 = vmatprep.subr.msk.bf16.mxu0 %vm97_vm1, %v4015_v6 }
 0x149   :  { %v2343_v25 = vpop.permute.xlu1 %2342  ;;  %3775 = vmatmul.mubr.msk.bf16.gmra.mrb[104].mxu1 %vm72_vm0, %v2045_v12 }
 0x14a   :  { %3778 = vmatprep.mubr.msk.bf16.mxu1 %vm72_vm0, %v2047_v16 }
 0x14c   :  { %v3552_v26 = vpop.f32.mrb[0].mxu1  ;;  %v2192_v28 = vpop.permute.xlu0 %2191 }
 0x14d   :  { %v337_v32 = vmax.f32 %v4294_v11, %v3552_v26  ;;  %v2194_v33 = vpop.permute.xlu1 %2193  ;;  %v272_v34 = vpop.f32.mrb[1].mxu1  ;;  %3788 = vmatprep.mubr.msk.bf16.mxu0 %vm72_vm0, %v2192_v28 }
 0x14e   :  { %v335_v36 = vmax.f32 %v4297_v13, %v272_v34  ;;  %v3553_v40 = vpop.f32.mrb[2].mxu1  ;;  %3789 = vmatmul.mubr.msk.bf16.gmra.mrb[116].mxu0 %vm72_vm0, %v2194_v33 }
 0x14f   :  { %v338_v41 = vmax.f32 %v4302_v14, %v3553_v40  ;;  %v275_v42 = vpop.f32.mrb[3].mxu1 }
 0x150   :  { %v336_v43 = vmax.f32 %v4306_v15, %v275_v42  ;;  %v2345_v44 = vpop.permute.xlu0 %2344 }
 0x151   :  { %v2347_v45 = vpop.permute.xlu1 %2346  ;;  %3779 = vmatmul.mubr.msk.bf16.gmra.mrb[108].mxu1 %vm72_vm0, %v2049_v17 }
 0x152   :  { %3802 = vmatprep.mubr.msk.bf16.mxu1 %vm72_vm0, %v2341_v24 }
 0x154   :  { %v3556_v11 = vpop.f32.mrb[4].mxu1  ;;  %v2196_v46 = vpop.permute.xlu0 %2195 }
 0x155   :  { %v341_v47 = vmax.f32 %v4317_v19, %v3556_v11  ;;  %v2198_v48 = vpop.permute.xlu1 %2197  ;;  %v288_v13 = vpop.f32.mrb[5].mxu1  ;;  %3792 = vmatprep.mubr.msk.bf16.mxu0 %vm72_vm0, %v2196_v46 }
 0x156   :  { %v339_v49 = vmax.f32 %v4320_v21, %v288_v13  ;;  %v3557_v14 = vpop.f32.mrb[6].mxu1  ;;  %3793 = vmatmul.mubr.msk.bf16.gmra.mrb[120].mxu0 %vm72_vm0, %v2198_v48 }
 0x157   :  { %v342_v15 = vmax.f32 %v4325_v22, %v3557_v14  ;;  %v291_v50 = vpop.f32.mrb[7].mxu1 }
 0x158   :  { %v340_v51 = vmax.f32 %v4329_v23, %v291_v50  ;;  %v2349_v52 = vpop.permute.xlu0 %2348 }
 0x159   :  { %v2351_v53 = vpop.permute.xlu1 %2350  ;;  %v3570_v54 = vpop.f32.mrb[16].mxu0  ;;  %3803 = vmatmul.mubr.msk.bf16.vlgmr.msra.gmra.mrb[112].mxu1 %vm72_vm0, %v2343_v25 }
 0x15a   :  { %v4496_v19 = vmax.f32 %v337_v32, %v3570_v54  ;;  %3837 = vmatpush3.bf16.msra.mxu1 %v4021_v7  ;;  %v425_v55 = vpop.f32.mrb[17].mxu0  ;;  %3806 = vmatprep.mubr.msk.bf16.mxu1 %vm72_vm0, %v2345_v44 }
 0x15b   :  { %v4500_v21 = vmax.f32 %v335_v36, %v425_v55  ;;  %v3571_v0 = vpop.f32.mrb[18].mxu0  ;;  %3909 = vmatprep.subr.msk.bf16.mxu1 %vm97_vm1, %v4015_v6 }
 0x15c   :  { %v4504_v22 = vmax.f32 %v338_v41, %v3571_v0  ;;  %v3560_v23 = vpop.f32.mrb[8].mxu1  ;;  %v2200_v56 = vpop.permute.xlu0 %2199 }
 0x15d   :  { %v345_v2 = vmax.f32 %v4337_v27, %v3560_v23  ;;  %v428_v57 = vpop.f32.mrb[19].mxu0  ;;  %v2202_v58 = vpop.permute.xlu1 %2201  ;;  %3796 = vmatprep.mubr.msk.bf16.mxu0 %vm72_vm0, %v2200_v56 }
 0x15e   :  { %v4508_v59 = vmax.f32 %v336_v43, %v428_v57  ;;  %v304_v1 = vpop.f32.mrb[9].mxu1  ;;  %3797 = vmatmul.mubr.msk.bf16.gmra.mrb[124].mxu0 %vm72_vm0, %v2202_v58 }
 0x15f   :  { %v343_v3 = vmax.f32 %v4340_v29, %v304_v1  ;;  %v3561_v4 = vpop.f32.mrb[10].mxu1 }
 0x160   :  { %v346_v6 = vmax.f32 %v4345_v30, %v3561_v4  ;;  %v307_v60 = vpop.f32.mrb[11].mxu1  ;;  %v2353_v5 = vpop.permute.xlu0 %2352 }
 0x161   :  { %v344_v61 = vmax.f32 %v4349_v31, %v307_v60  ;;  %v2355_v62 = vpop.permute.xlu1 %2354  ;;  %v3574_v27 = vpop.f32.mrb[20].mxu0  ;;  %3807 = vmatmul.mubr.msk.bf16.gmra.mrb[116].mxu1 %vm72_vm0, %v2347_v45 }
 0x162   :  { %v4515_v63 = vmax.f32 %v341_v47, %v3574_v27  ;;  %v441_v10 = vpop.f32.mrb[21].mxu0  ;;  %3810 = vmatprep.mubr.msk.bf16.mxu1 %vm72_vm0, %v2349_v52 }
 0x163   :  { %v4518_v12 = vmax.f32 %v339_v49, %v441_v10  ;;  %v3575_v8 = vpop.f32.mrb[22].mxu0 }
 0x164   :  { %v4520_v29 = vmax.f32 %v342_v15, %v3575_v8  ;;  %v3564_v9 = vpop.f32.mrb[12].mxu1  ;;  %v2494_v30 = vpop.permute.xlu0 %2493 }
 0x165   :  { %v349_v16 = vmax.f32 %v4357_v35, %v3564_v9  ;;  %v444_v17 = vpop.f32.mrb[23].mxu0  ;;  %v2496_v31 = vpop.permute.xlu1 %2495  ;;  %3820 = vmatprep.mubr.msk.bf16.mxu0 %vm72_vm0, %v2494_v30 }
 0x166   :  { %v4524_v18 = vmax.f32 %v340_v51, %v444_v17  ;;  %v320_v20 = vpop.f32.mrb[13].mxu1  ;;  %3821 = vmatmul.mubr.msk.bf16.vlgmr.msra.gmra.mrb[128].mxu0 %vm72_vm0, %v2496_v31 }
 0x167   :  { %v347_v24 = vmax.f32 %v4360_v37, %v320_v20  ;;  %v3565_v25 = vpop.f32.mrb[14].mxu1  ;;  %3855 = vmatpush3.bf16.msra.mxu0 %v4021_v7 }
 0x168   :  { %v350_v26 = vmax.f32 %v4365_v38, %v3565_v25  ;;  %v323_v28 = vpop.f32.mrb[15].mxu1  ;;  %v2647_v32 = vpop.permute.xlu0 %2646 }
 0x169   :  { %v348_v35 = vmax.f32 %v4370_v39, %v323_v28  ;;  %v2649_v33 = vpop.permute.xlu1 %2648  ;;  %v3578_v34 = vpop.f32.mrb[24].mxu0  ;;  %3811 = vmatmul.mubr.msk.bf16.gmra.mrb[120].mxu1 %vm72_vm0, %v2351_v53 }
 0x16a   :  { %v4532_v36 = vmax.f32 %v345_v2, %v3578_v34  ;;  %v457_v40 = vpop.f32.mrb[25].mxu0  ;;  %3814 = vmatprep.mubr.msk.bf16.mxu1 %vm72_vm0, %v2353_v5 }
 0x16b   :  { %v4535_v41 = vmax.f32 %v343_v3, %v457_v40  ;;  %v3579_v37 = vpop.f32.mrb[26].mxu0 }
 0x16c   :  { %v4537_v42 = vmax.f32 %v346_v6, %v3579_v37  ;;  %v3588_v43 = vpop.f32.mrb[16].mxu1  ;;  %v2498_v38 = vpop.permute.xlu0 %2497 }
 0x16d   :  { %v643_v44 = vmax.f32 %v4496_v19, %v3588_v43  ;;  %v460_v45 = vpop.f32.mrb[27].mxu0  ;;  %v2500_v39 = vpop.permute.xlu1 %2499  ;;  %3824 = vmatprep.mubr.msk.bf16.mxu0 %vm72_vm0, %v2498_v38 }
 0x16e   :  { %v4541_v11 = vmax.f32 %v344_v61, %v460_v45  ;;  %v578_v46 = vpop.f32.mrb[17].mxu1  ;;  %3825 = vmatmul.mubr.msk.bf16.gmra.mrb[132].mxu0 %vm72_vm0, %v2500_v39 }
 0x16f   :  { %v641_v47 = vmax.f32 %v4500_v21, %v578_v46  ;;  %v3589_v48 = vpop.f32.mrb[18].mxu1 }
 0x170   :  { %v644_v13 = vmax.f32 %v4504_v22, %v3589_v48  ;;  %v581_v49 = vpop.f32.mrb[19].mxu1  ;;  %v2651_v14 = vpop.permute.xlu0 %2650 }
 0x171   :  { %v642_v15 = vmax.f32 %v4508_v59, %v581_v49  ;;  %v2653_v50 = vpop.permute.xlu1 %2652  ;;  %v3582_v51 = vpop.f32.mrb[28].mxu0  ;;  %3815 = vmatmul.mubr.msk.bf16.gmra.mrb[124].mxu1 %vm72_vm0, %v2355_v62 }
 0x172   :  { %v4548_v52 = vmax.f32 %v349_v16, %v3582_v51  ;;  %v473_v53 = vpop.f32.mrb[29].mxu0  ;;  %3838 = vmatprep.mubr.msk.bf16.mxu1 %vm72_vm0, %v2647_v32 }
 0x173   :  { %v4551_v54 = vmax.f32 %v347_v24, %v473_v53  ;;  %v3583_v19 = vpop.f32.mrb[30].mxu0 }
 0x174   :  { %v4553_v55 = vmax.f32 %v350_v26, %v3583_v19  ;;  %v3592_v21 = vpop.f32.mrb[20].mxu1  ;;  %v2502_v0 = vpop.permute.xlu0 %2501 }
 0x175   :  { %v647_v22 = vmax.f32 %v4515_v63, %v3592_v21  ;;  %v476_v23 = vpop.f32.mrb[31].mxu0  ;;  %v2504_v56 = vpop.permute.xlu1 %2503  ;;  %3828 = vmatprep.mubr.msk.bf16.mxu0 %vm72_vm0, %v2502_v0 }
 0x176   :  { %v4557_v2 = vmax.f32 %v348_v35, %v476_v23  ;;  %v594_v57 = vpop.f32.mrb[21].mxu1  ;;  %3829 = vmatmul.mubr.msk.bf16.gmra.mrb[136].mxu0 %vm72_vm0, %v2504_v56 }
 0x177   :  { %v645_v58 = vmax.f32 %v4518_v12, %v594_v57  ;;  %v3593_v59 = vpop.f32.mrb[22].mxu1 }
 0x178   :  { %v648_v1 = vmax.f32 %v4520_v29, %v3593_v59  ;;  %v597_v3 = vpop.f32.mrb[23].mxu1  ;;  %v2655_v4 = vpop.permute.xlu0 %2654 }
 0x179   :  { %v646_v6 = vmax.f32 %v4524_v18, %v597_v3  ;;  %v2657_v60 = vpop.permute.xlu1 %2656  ;;  %v3606_v5 = vpop.f32.mrb[32].mxu0  ;;  %3839 = vmatmul.mubr.msk.bf16.vlgmr.msra.gmra.mrb[128].mxu1 %vm72_vm0, %v2649_v33 }
 0x17a   :  { %v4564_v61 = vmax.f32 %v643_v44, %v3606_v5  ;;  %3873 = vmatpush3.bf16.msra.mxu1 %v4021_v7  ;;  %v731_v62 = vpop.f32.mrb[33].mxu0  ;;  %3842 = vmatprep.mubr.msk.bf16.mxu1 %vm72_vm0, %v2651_v14 }
 0x17b   :  { %v4568_v27 = vmax.f32 %v641_v47, %v731_v62  ;;  %v3607_v63 = vpop.f32.mrb[34].mxu0 }
 0x17c   :  { %v4570_v10 = vmax.f32 %v644_v13, %v3607_v63  ;;  %v3596_v12 = vpop.f32.mrb[24].mxu1  ;;  %v2506_v8 = vpop.permute.xlu0 %2505 }
 0x17d   :  { %v651_v29 = vmax.f32 %v4532_v36, %v3596_v12  ;;  %v734_v9 = vpop.f32.mrb[35].mxu0  ;;  %v2508_v30 = vpop.permute.xlu1 %2507  ;;  %3832 = vmatprep.mubr.msk.bf16.mxu0 %vm72_vm0, %v2506_v8 }
 0x17e   :  { %v4574_v16 = vmax.f32 %v642_v15, %v734_v9  ;;  %v610_v17 = vpop.f32.mrb[25].mxu1  ;;  %3833 = vmatmul.mubr.msk.bf16.gmra.mrb[140].mxu0 %vm72_vm0, %v2508_v30 }
 0x17f   :  { %v649_v7 = vmax.f32 %v4535_v41, %v610_v17  ;;  %v3597_v31 = vpop.f32.mrb[26].mxu1 }
 0x180   :  { %v652_v18 = vmax.f32 %v4537_v42, %v3597_v31  ;;  %v613_v20 = vpop.f32.mrb[27].mxu1  ;;  %v2659_v24 = vpop.permute.xlu0 %2658 }
 0x181   :  { %v650_v25 = vmax.f32 %v4541_v11, %v613_v20  ;;  %v2661_v26 = vpop.permute.xlu1 %2660  ;;  %v3610_v28 = vpop.f32.mrb[36].mxu0  ;;  %3843 = vmatmul.mubr.msk.bf16.gmra.mrb[132].mxu1 %vm72_vm0, %v2653_v50 }
 0x182   :  { %v4581_v32 = vmax.f32 %v647_v22, %v3610_v28  ;;  %v747_v35 = vpop.f32.mrb[37].mxu0  ;;  %3846 = vmatprep.mubr.msk.bf16.mxu1 %vm72_vm0, %v2655_v4 }
 0x183   :  { %v4584_v33 = vmax.f32 %v645_v58, %v747_v35  ;;  %v3611_v34 = vpop.f32.mrb[38].mxu0 }
 0x184   :  { %v4586_v36 = vmax.f32 %v648_v1, %v3611_v34  ;;  %v3600_v40 = vpop.f32.mrb[28].mxu1  ;;  %v2800_v41 = vpop.permute.xlu0 %2799 }
 0x185   :  { %v655_v37 = vmax.f32 %v4548_v52, %v3600_v40  ;;  %v750_v42 = vpop.f32.mrb[39].mxu0  ;;  %v2802_v43 = vpop.permute.xlu1 %2801  ;;  %3856 = vmatprep.mubr.msk.bf16.mxu0 %vm72_vm0, %v2800_v41 }
 0x186   :  { %v4590_v38 = vmax.f32 %v646_v6, %v750_v42  ;;  %v626_v44 = vpop.f32.mrb[29].mxu1  ;;  %3857 = vmatmul.mubr.msk.bf16.vlgmr.msra.gmra.mrb[144].mxu0 %vm72_vm0, %v2802_v43 }
 0x187   :  { %v653_v45 = vmax.f32 %v4551_v54, %v626_v44  ;;  %v3601_v39 = vpop.f32.mrb[30].mxu1 }
 0x188   :  { %v656_v11 = vmax.f32 %v4553_v55, %v3601_v39  ;;  %v629_v46 = vpop.f32.mrb[31].mxu1  ;;  %v2953_v47 = vpop.permute.xlu0 %2952 }
 0x189   :  { %v654_v48 = vmax.f32 %v4557_v2, %v629_v46  ;;  %v2955_v13 = vpop.permute.xlu1 %2954  ;;  %v3614_v49 = vpop.f32.mrb[40].mxu0  ;;  %3847 = vmatmul.mubr.msk.bf16.gmra.mrb[136].mxu1 %vm72_vm0, %v2657_v60 }
 0x18a   :  { %v4597_v14 = vmax.f32 %v651_v29, %v3614_v49  ;;  %v763_v15 = vpop.f32.mrb[41].mxu0  ;;  %3850 = vmatprep.mubr.msk.bf16.mxu1 %vm72_vm0, %v2659_v24 }
 0x18b   :  { %v4600_v50 = vmax.f32 %v649_v7, %v763_v15  ;;  %v3615_v51 = vpop.f32.mrb[42].mxu0 }
 0x18c   :  { %v4602_v52 = vmax.f32 %v652_v18, %v3615_v51  ;;  %v3624_v53 = vpop.f32.mrb[32].mxu1  ;;  %v2804_v54 = vpop.permute.xlu0 %2803 }
 0x18d   :  { %v949_v19 = vmax.f32 %v4564_v61, %v3624_v53  ;;  %v766_v55 = vpop.f32.mrb[43].mxu0  ;;  %v2806_v21 = vpop.permute.xlu1 %2805  ;;  %3860 = vmatprep.mubr.msk.bf16.mxu0 %vm72_vm0, %v2804_v54 }
 0x18e   :  { %v4606_v0 = vmax.f32 %v650_v25, %v766_v55  ;;  %v884_v22 = vpop.f32.mrb[33].mxu1  ;;  %3861 = vmatmul.mubr.msk.bf16.gmra.mrb[148].mxu0 %vm72_vm0, %v2806_v21 }
 0x18f   :  { %v947_v23 = vmax.f32 %v4568_v27, %v884_v22  ;;  %v3625_v56 = vpop.f32.mrb[34].mxu1 }
 0x190   :  { %v950_v2 = vmax.f32 %v4570_v10, %v3625_v56  ;;  %v887_v57 = vpop.f32.mrb[35].mxu1  ;;  %v2957_v58 = vpop.permute.xlu0 %2956 }
 0x191   :  { %v948_v59 = vmax.f32 %v4574_v16, %v887_v57  ;;  %v2959_v1 = vpop.permute.xlu1 %2958  ;;  %v3618_v3 = vpop.f32.mrb[44].mxu0  ;;  %3851 = vmatmul.mubr.msk.bf16.gmra.mrb[140].mxu1 %vm72_vm0, %v2661_v26 }
 0x192   :  { %v4613_v4 = vmax.f32 %v655_v37, %v3618_v3  ;;  %v779_v6 = vpop.f32.mrb[45].mxu0  ;;  %3874 = vmatprep.mubr.msk.bf16.mxu1 %vm72_vm0, %v2953_v47 }
 0x193   :  { %v4616_v60 = vmax.f32 %v653_v45, %v779_v6  ;;  %v3619_v5 = vpop.f32.mrb[46].mxu0 }
 0x194   :  { %v4618_v61 = vmax.f32 %v656_v11, %v3619_v5  ;;  %v3628_v62 = vpop.f32.mrb[36].mxu1  ;;  %v2808_v27 = vpop.permute.xlu0 %2807 }
 0x195   :  { %v953_v63 = vmax.f32 %v4581_v32, %v3628_v62  ;;  %v782_v10 = vpop.f32.mrb[47].mxu0  ;;  %v2810_v12 = vpop.permute.xlu1 %2809  ;;  %3864 = vmatprep.mubr.msk.bf16.mxu0 %vm72_vm0, %v2808_v27 }
 0x196   :  { %v4622_v8 = vmax.f32 %v654_v48, %v782_v10  ;;  %v900_v29 = vpop.f32.mrb[37].mxu1  ;;  %3865 = vmatmul.mubr.msk.bf16.gmra.mrb[152].mxu0 %vm72_vm0, %v2810_v12 }
 0x197   :  { %v951_v9 = vmax.f32 %v4584_v33, %v900_v29  ;;  %v3629_v30 = vpop.f32.mrb[38].mxu1 }
 0x198   :  { %v954_v16 = vmax.f32 %v4586_v36, %v3629_v30  ;;  %v903_v17 = vpop.f32.mrb[39].mxu1  ;;  %v2961_v7 = vpop.permute.xlu0 %2960 }
 0x199   :  { %v952_v31 = vmax.f32 %v4590_v38, %v903_v17  ;;  %v2963_v18 = vpop.permute.xlu1 %2962  ;;  %v3642_v20 = vpop.f32.mrb[48].mxu0  ;;  %3875 = vmatmul.mubr.msk.bf16.vlgmr.msra.gmra.mrb[144].mxu1 %vm72_vm0, %v2955_v13 }
 0x19a   :  { %v4629_v24 = vmax.f32 %v949_v19, %v3642_v20  ;;  %v1037_v25 = vpop.f32.mrb[49].mxu0  ;;  %3878 = vmatprep.mubr.msk.bf16.mxu1 %vm72_vm0, %v2957_v58 }
 0x19b   :  { %v4632_v26 = vmax.f32 %v947_v23, %v1037_v25  ;;  %v3643_v28 = vpop.f32.mrb[50].mxu0 }
 0x19c   :  { %v4634_v32 = vmax.f32 %v950_v2, %v3643_v28  ;;  %v3632_v35 = vpop.f32.mrb[40].mxu1  ;;  %v2812_v33 = vpop.permute.xlu0 %2811 }
 0x19d   :  { %v957_v34 = vmax.f32 %v4597_v14, %v3632_v35  ;;  %v1040_v36 = vpop.f32.mrb[51].mxu0  ;;  %v2814_v40 = vpop.permute.xlu1 %2813  ;;  %3868 = vmatprep.mubr.msk.bf16.mxu0 %vm72_vm0, %v2812_v33 }
 0x19e   :  { %v4638_v41 = vmax.f32 %v948_v59, %v1040_v36  ;;  %v916_v37 = vpop.f32.mrb[41].mxu1  ;;  %3869 = vmatmul.mubr.msk.bf16.gmra.mrb[156].mxu0 %vm72_vm0, %v2814_v40 }
 0x19f   :  { %v955_v42 = vmax.f32 %v4600_v50, %v916_v37  ;;  %v3633_v43 = vpop.f32.mrb[42].mxu1 }
 0x1a0   :  { %v958_v38 = vmax.f32 %v4602_v52, %v3633_v43  ;;  %v919_v44 = vpop.f32.mrb[43].mxu1  ;;  %v2965_v55 = vpop.permute.xlu0 %2964 }
 0x1a1   :  { %v956_v45 = vmax.f32 %v4606_v0, %v919_v44  ;;  %v3646_v39 = vpop.f32.mrb[52].mxu0  ;;  %3879 = vmatmul.mubr.msk.bf16.gmra.mrb[148].mxu1 %vm72_vm0, %v2959_v1  ;;  %v2967_v5 = vpop.permute.xlu1 %2966 }
 0x1a2   :  { %v4645_v11 = vmax.f32 %v953_v63, %v3646_v39  ;;  %v1053_v46 = vpop.f32.mrb[53].mxu0  ;;  %3882 = vmatprep.mubr.msk.bf16.mxu1 %vm72_vm0, %v2961_v7 }
 0x1a3   :  { %v4648_v47 = vmax.f32 %v951_v9, %v1053_v46  ;;  %v3647_v48 = vpop.f32.mrb[54].mxu0 }
 0x1a4   :  { %v4650_v13 = vmax.f32 %v954_v16, %v3647_v48  ;;  %v3636_v49 = vpop.f32.mrb[44].mxu1  ;;  %v1056_v14 = vpop.f32.mrb[55].mxu0 }
 0x1a5   :  { %v961_v15 = vmax.f32 %v4613_v4, %v3636_v49  ;;  %v4653_v50 = vmax.f32 %v952_v31, %v1056_v14  ;;  %v932_v51 = vpop.f32.mrb[45].mxu1 }
 0x1a6   :  { %v959_v52 = vmax.f32 %v4616_v60, %v932_v51  ;;  %v3637_v53 = vpop.f32.mrb[46].mxu1 }
 0x1a7   :  { %v962_v54 = vmax.f32 %v4618_v61, %v3637_v53  ;;  %v935_v19 = vpop.f32.mrb[47].mxu1 }
 0x1a8   :  { %v960_v21 = vmax.f32 %v4622_v8, %v935_v19 }
 0x1a9   :  { %v3650_v0 = vpop.f32.mrb[56].mxu0  ;;  %3883 = vmatmul.mubr.msk.bf16.gmra.mrb[152].mxu1 %vm72_vm0, %v2963_v18 }
 0x1aa   :  { %v4659_v22 = vmax.f32 %v957_v34, %v3650_v0  ;;  %v1069_v23 = vpop.f32.mrb[57].mxu0  ;;  %3886 = vmatprep.mubr.msk.bf16.mxu1 %vm72_vm0, %v2965_v55 }
 0x1ab   :  { %v4662_v56 = vmax.f32 %v955_v42, %v1069_v23  ;;  %v3651_v2 = vpop.f32.mrb[58].mxu0 }
 0x1ac   :  { %v4664_v57 = vmax.f32 %v958_v38, %v3651_v2  ;;  %v1072_v58 = vpop.f32.mrb[59].mxu0  ;;  %v3660_v59 = vpop.f32.mrb[48].mxu1 }
 0x1ad   :  { %v4666_v1 = vmax.f32 %v956_v45, %v1072_v58  ;;  %v1255_v3 = vmax.f32 %v4629_v24, %v3660_v59  ;;  %v1190_v4 = vpop.f32.mrb[49].mxu1 }
 0x1ae   :  { %v1253_v6 = vmax.f32 %v4632_v26, %v1190_v4  ;;  %v3661_v60 = vpop.f32.mrb[50].mxu1 }
 0x1af   :  { %v1256_v61 = vmax.f32 %v4634_v32, %v3661_v60  ;;  %v1193_v62 = vpop.f32.mrb[51].mxu1 }
 0x1b0   :  { %v1254_v27 = vmax.f32 %v4638_v41, %v1193_v62 }
 0x1b1   :  { %v3654_v63 = vpop.f32.mrb[60].mxu0  ;;  %3887 = vmatmul.mubr.msk.bf16.gmra.mrb[156].mxu1 %vm72_vm0, %v2967_v5 }
 0x1b2   :  { %v4673_v10 = vmax.f32 %v961_v15, %v3654_v63  ;;  %v1085_v12 = vpop.f32.mrb[61].mxu0 }
 0x1b3   :  { %v4675_v8 = vmax.f32 %v959_v52, %v1085_v12  ;;  %v3655_v29 = vpop.f32.mrb[62].mxu0 }
 0x1b4   :  { %v4677_v9 = vmax.f32 %v962_v54, %v3655_v29  ;;  %v1088_v30 = vpop.f32.mrb[63].mxu0  ;;  %v3664_v16 = vpop.f32.mrb[52].mxu1 }
 0x1b5   :  { %v4679_v17 = vmax.f32 %v960_v21, %v1088_v30  ;;  %v1259_v7 = vmax.f32 %v4645_v11, %v3664_v16  ;;  %v1206_v31 = vpop.f32.mrb[53].mxu1 }
 0x1b6   :  { %v1257_v18 = vmax.f32 %v4648_v47, %v1206_v31  ;;  %v3665_v20 = vpop.f32.mrb[54].mxu1 }
 0x1b7   :  { %v1260_v24 = vmax.f32 %v4650_v13, %v3665_v20  ;;  %v1209_v25 = vpop.f32.mrb[55].mxu1 }
 0x1b8   :  { %v1258_v26 = vmax.f32 %v4653_v50, %v1209_v25 }
 0x1b9   :  { %v3678_v28 = vpop.f32.mrb[64].mxu0 }
 0x1ba   :  { %v4685_v32 = vmax.f32 %v1255_v3, %v3678_v28  ;;  %v1343_v35 = vpop.f32.mrb[65].mxu0 }
 0x1bb   :  { %v4687_v33 = vmax.f32 %v1253_v6, %v1343_v35  ;;  %v3679_v34 = vpop.f32.mrb[66].mxu0 }
 0x1bc   :  { %v4689_v36 = vmax.f32 %v1256_v61, %v3679_v34  ;;  %v3668_v40 = vpop.f32.mrb[56].mxu1  ;;  %v1346_v41 = vpop.f32.mrb[67].mxu0 }
 0x1bd   :  { %v1263_v37 = vmax.f32 %v4659_v22, %v3668_v40  ;;  %v4692_v42 = vmax.f32 %v1254_v27, %v1346_v41  ;;  %v1222_v43 = vpop.f32.mrb[57].mxu1 }
 0x1be   :  { %v1261_v38 = vmax.f32 %v4662_v56, %v1222_v43  ;;  %v3669_v44 = vpop.f32.mrb[58].mxu1 }
 0x1bf   :  { %v1264_v45 = vmax.f32 %v4664_v57, %v3669_v44  ;;  %v1225_v39 = vpop.f32.mrb[59].mxu1 }
 0x1c0   :  { %v1262_v11 = vmax.f32 %v4666_v1, %v1225_v39 }
 0x1c1   :  { %v3682_v46 = vpop.f32.mrb[68].mxu0 }
 0x1c2   :  { %v4697_v47 = vmax.f32 %v1259_v7, %v3682_v46  ;;  %v1359_v48 = vpop.f32.mrb[69].mxu0 }
 0x1c3   :  { %v4699_v13 = vmax.f32 %v1257_v18, %v1359_v48  ;;  %v3683_v49 = vpop.f32.mrb[70].mxu0 }
 0x1c4   :  { %v4701_v14 = vmax.f32 %v1260_v24, %v3683_v49  ;;  %v3672_v15 = vpop.f32.mrb[60].mxu1  ;;  %v1362_v50 = vpop.f32.mrb[71].mxu0 }
 0x1c5   :  { %v1267_v51 = vmax.f32 %v4673_v10, %v3672_v15  ;;  %v4704_v52 = vmax.f32 %v1258_v26, %v1362_v50  ;;  %v1238_v53 = vpop.f32.mrb[61].mxu1 }
 0x1c6   :  { %v1265_v54 = vmax.f32 %v4675_v8, %v1238_v53  ;;  %v3673_v19 = vpop.f32.mrb[62].mxu1 }
 0x1c7   :  { %v1268_v55 = vmax.f32 %v4677_v9, %v3673_v19  ;;  %v1241_v21 = vpop.f32.mrb[63].mxu1 }
 0x1c8   :  { %v1266_v0 = vmax.f32 %v4679_v17, %v1241_v21 }
 0x1c9   :  { %v3686_v22 = vpop.f32.mrb[72].mxu0 }
 0x1ca   :  { %v4709_v23 = vmax.f32 %v1263_v37, %v3686_v22  ;;  %v1375_v56 = vpop.f32.mrb[73].mxu0 }
 0x1cb   :  { %v4711_v2 = vmax.f32 %v1261_v38, %v1375_v56  ;;  %v3687_v57 = vpop.f32.mrb[74].mxu0 }
 0x1cc   :  { %v4713_v58 = vmax.f32 %v1264_v45, %v3687_v57  ;;  %v1378_v59 = vpop.f32.mrb[75].mxu0  ;;  %v3696_v1 = vpop.f32.mrb[64].mxu1 }
 0x1cd   :  { %v4715_v3 = vmax.f32 %v1262_v11, %v1378_v59  ;;  %v1561_v4 = vmax.f32 %v4685_v32, %v3696_v1  ;;  %v1496_v6 = vpop.f32.mrb[65].mxu1 }
 0x1ce   :  { %v1559_v60 = vmax.f32 %v4687_v33, %v1496_v6  ;;  %v3697_v5 = vpop.f32.mrb[66].mxu1 }
 0x1cf   :  { %v1562_v61 = vmax.f32 %v4689_v36, %v3697_v5  ;;  %v1499_v62 = vpop.f32.mrb[67].mxu1 }
 0x1d0   :  { %v1560_v27 = vmax.f32 %v4692_v42, %v1499_v62 }
 0x1d1   :  { %v3690_v63 = vpop.f32.mrb[76].mxu0 }
 0x1d2   :  { %v4721_v10 = vmax.f32 %v1267_v51, %v3690_v63  ;;  %v1391_v12 = vpop.f32.mrb[77].mxu0 }
 0x1d3   :  { %v4723_v8 = vmax.f32 %v1265_v54, %v1391_v12  ;;  %v3691_v29 = vpop.f32.mrb[78].mxu0 }
 0x1d4   :  { %v4725_v9 = vmax.f32 %v1268_v55, %v3691_v29  ;;  %v1394_v30 = vpop.f32.mrb[79].mxu0  ;;  %v3700_v16 = vpop.f32.mrb[68].mxu1 }
 0x1d5   :  { %v4727_v17 = vmax.f32 %v1266_v0, %v1394_v30  ;;  %v1565_v7 = vmax.f32 %v4697_v47, %v3700_v16  ;;  %v1512_v31 = vpop.f32.mrb[69].mxu1 }
 0x1d6   :  { %v1563_v18 = vmax.f32 %v4699_v13, %v1512_v31  ;;  %v3701_v20 = vpop.f32.mrb[70].mxu1 }
 0x1d7   :  { %v1566_v24 = vmax.f32 %v4701_v14, %v3701_v20  ;;  %v1515_v25 = vpop.f32.mrb[71].mxu1 }
 0x1d8   :  { %v1564_v26 = vmax.f32 %v4704_v52, %v1515_v25 }
 0x1d9   :  { %v3714_v28 = vpop.f32.mrb[80].mxu0 }
 0x1da   :  { %v4733_v32 = vmax.f32 %v1561_v4, %v3714_v28  ;;  %v1649_v35 = vpop.f32.mrb[81].mxu0 }
 0x1db   :  { %v4735_v33 = vmax.f32 %v1559_v60, %v1649_v35  ;;  %v3715_v34 = vpop.f32.mrb[82].mxu0 }
 0x1dc   :  { %v4737_v36 = vmax.f32 %v1562_v61, %v3715_v34  ;;  %v3704_v40 = vpop.f32.mrb[72].mxu1  ;;  %v1652_v41 = vpop.f32.mrb[83].mxu0 }
 0x1dd   :  { %v1569_v37 = vmax.f32 %v4709_v23, %v3704_v40  ;;  %v4740_v42 = vmax.f32 %v1560_v27, %v1652_v41  ;;  %v1528_v43 = vpop.f32.mrb[73].mxu1 }
 0x1de   :  { %v1567_v38 = vmax.f32 %v4711_v2, %v1528_v43  ;;  %v3705_v44 = vpop.f32.mrb[74].mxu1 }
 0x1df   :  { %v1570_v45 = vmax.f32 %v4713_v58, %v3705_v44  ;;  %v1531_v39 = vpop.f32.mrb[75].mxu1 }
 0x1e0   :  { %v1568_v11 = vmax.f32 %v4715_v3, %v1531_v39 }
 0x1e1   :  { %v3718_v46 = vpop.f32.mrb[84].mxu0 }
 0x1e2   :  { %v4745_v47 = vmax.f32 %v1565_v7, %v3718_v46  ;;  %v1665_v48 = vpop.f32.mrb[85].mxu0 }
 0x1e3   :  { %v4747_v13 = vmax.f32 %v1563_v18, %v1665_v48  ;;  %v3719_v49 = vpop.f32.mrb[86].mxu0 }
 0x1e4   :  { %v4749_v14 = vmax.f32 %v1566_v24, %v3719_v49  ;;  %v3708_v15 = vpop.f32.mrb[76].mxu1  ;;  %v1668_v50 = vpop.f32.mrb[87].mxu0 }
 0x1e5   :  { %v1573_v51 = vmax.f32 %v4721_v10, %v3708_v15  ;;  %v4752_v52 = vmax.f32 %v1564_v26, %v1668_v50  ;;  %v1544_v53 = vpop.f32.mrb[77].mxu1 }
 0x1e6   :  { %v1571_v54 = vmax.f32 %v4723_v8, %v1544_v53  ;;  %v3709_v19 = vpop.f32.mrb[78].mxu1 }
 0x1e7   :  { %v1574_v55 = vmax.f32 %v4725_v9, %v3709_v19  ;;  %v1547_v21 = vpop.f32.mrb[79].mxu1 }
 0x1e8   :  { %v1572_v0 = vmax.f32 %v4727_v17, %v1547_v21 }
 0x1e9   :  { %v3722_v22 = vpop.f32.mrb[88].mxu0 }
 0x1ea   :  { %v4757_v23 = vmax.f32 %v1569_v37, %v3722_v22  ;;  %v1681_v56 = vpop.f32.mrb[89].mxu0 }
 0x1eb   :  { %v4759_v2 = vmax.f32 %v1567_v38, %v1681_v56  ;;  %v3723_v57 = vpop.f32.mrb[90].mxu0 }
 0x1ec   :  { %v4761_v58 = vmax.f32 %v1570_v45, %v3723_v57  ;;  %v1684_v59 = vpop.f32.mrb[91].mxu0  ;;  %v3732_v1 = vpop.f32.mrb[80].mxu1 }
 0x1ed   :  { %v4763_v3 = vmax.f32 %v1568_v11, %v1684_v59  ;;  %v1867_v4 = vmax.f32 %v4733_v32, %v3732_v1  ;;  %v1802_v6 = vpop.f32.mrb[81].mxu1 }
 0x1ee   :  { %v1865_v60 = vmax.f32 %v4735_v33, %v1802_v6  ;;  %v3733_v5 = vpop.f32.mrb[82].mxu1 }
 0x1ef   :  { %v1868_v61 = vmax.f32 %v4737_v36, %v3733_v5  ;;  %v1805_v62 = vpop.f32.mrb[83].mxu1 }
 0x1f0   :  { %v1866_v27 = vmax.f32 %v4740_v42, %v1805_v62 }
 0x1f1   :  { %v3726_v63 = vpop.f32.mrb[92].mxu0 }
 0x1f2   :  { %v4769_v10 = vmax.f32 %v1573_v51, %v3726_v63  ;;  %v1697_v12 = vpop.f32.mrb[93].mxu0 }
 0x1f3   :  { %v4771_v8 = vmax.f32 %v1571_v54, %v1697_v12  ;;  %v3727_v29 = vpop.f32.mrb[94].mxu0 }
 0x1f4   :  { %v4773_v9 = vmax.f32 %v1574_v55, %v3727_v29  ;;  %v1700_v30 = vpop.f32.mrb[95].mxu0  ;;  %v3736_v16 = vpop.f32.mrb[84].mxu1 }
 0x1f5   :  { %v4775_v17 = vmax.f32 %v1572_v0, %v1700_v30  ;;  %v1871_v7 = vmax.f32 %v4745_v47, %v3736_v16  ;;  %v1818_v31 = vpop.f32.mrb[85].mxu1 }
 0x1f6   :  { %v1869_v18 = vmax.f32 %v4747_v13, %v1818_v31  ;;  %v3737_v20 = vpop.f32.mrb[86].mxu1 }
 0x1f7   :  { %v1872_v24 = vmax.f32 %v4749_v14, %v3737_v20  ;;  %v1821_v25 = vpop.f32.mrb[87].mxu1 }
 0x1f8   :  { %v1870_v26 = vmax.f32 %v4752_v52, %v1821_v25 }
 0x1f9   :  { %v3750_v28 = vpop.f32.mrb[96].mxu0 }
 0x1fa   :  { %v4781_v32 = vmax.f32 %v1867_v4, %v3750_v28  ;;  %v1955_v35 = vpop.f32.mrb[97].mxu0 }
 0x1fb   :  { %v4783_v33 = vmax.f32 %v1865_v60, %v1955_v35  ;;  %v3751_v34 = vpop.f32.mrb[98].mxu0 }
 0x1fc   :  { %v4785_v36 = vmax.f32 %v1868_v61, %v3751_v34  ;;  %v3740_v40 = vpop.f32.mrb[88].mxu1  ;;  %v1958_v41 = vpop.f32.mrb[99].mxu0 }
 0x1fd   :  { %v1875_v37 = vmax.f32 %v4757_v23, %v3740_v40  ;;  %v4788_v42 = vmax.f32 %v1866_v27, %v1958_v41  ;;  %v1834_v43 = vpop.f32.mrb[89].mxu1 }
 0x1fe   :  { %v1873_v38 = vmax.f32 %v4759_v2, %v1834_v43  ;;  %v3741_v44 = vpop.f32.mrb[90].mxu1 }
 0x1ff   :  { %v1876_v45 = vmax.f32 %v4761_v58, %v3741_v44  ;;  %v1837_v39 = vpop.f32.mrb[91].mxu1 }
 0x200   :  { %v1874_v11 = vmax.f32 %v4763_v3, %v1837_v39 }
 0x201   :  { %v3754_v46 = vpop.f32.mrb[100].mxu0 }
 0x202   :  { %v4793_v47 = vmax.f32 %v1871_v7, %v3754_v46  ;;  %v1971_v48 = vpop.f32.mrb[101].mxu0 }
 0x203   :  { %v4795_v13 = vmax.f32 %v1869_v18, %v1971_v48  ;;  %v3755_v49 = vpop.f32.mrb[102].mxu0 }
 0x204   :  { %v4797_v14 = vmax.f32 %v1872_v24, %v3755_v49  ;;  %v3744_v15 = vpop.f32.mrb[92].mxu1  ;;  %v1974_v50 = vpop.f32.mrb[103].mxu0 }
 0x205   :  { %v1879_v51 = vmax.f32 %v4769_v10, %v3744_v15  ;;  %v4800_v52 = vmax.f32 %v1870_v26, %v1974_v50  ;;  %v1850_v53 = vpop.f32.mrb[93].mxu1 }
 0x206   :  { %v1877_v54 = vmax.f32 %v4771_v8, %v1850_v53  ;;  %v3745_v19 = vpop.f32.mrb[94].mxu1 }
 0x207   :  { %v1880_v55 = vmax.f32 %v4773_v9, %v3745_v19  ;;  %v1853_v21 = vpop.f32.mrb[95].mxu1 }
 0x208   :  { %v1878_v0 = vmax.f32 %v4775_v17, %v1853_v21 }
 0x209   :  { %v3758_v22 = vpop.f32.mrb[104].mxu0 }
 0x20a   :  { %v4805_v23 = vmax.f32 %v1875_v37, %v3758_v22  ;;  %v1987_v56 = vpop.f32.mrb[105].mxu0 }
 0x20b   :  { %v4807_v2 = vmax.f32 %v1873_v38, %v1987_v56  ;;  %v3759_v57 = vpop.f32.mrb[106].mxu0 }
 0x20c   :  { %v4809_v58 = vmax.f32 %v1876_v45, %v3759_v57  ;;  %v1990_v59 = vpop.f32.mrb[107].mxu0  ;;  %v3768_v1 = vpop.f32.mrb[96].mxu1 }
 0x20d   :  { %v4811_v3 = vmax.f32 %v1874_v11, %v1990_v59  ;;  %v2173_v4 = vmax.f32 %v4781_v32, %v3768_v1  ;;  %v2108_v6 = vpop.f32.mrb[97].mxu1 }
 0x20e   :  { %v2171_v60 = vmax.f32 %v4783_v33, %v2108_v6  ;;  %v3769_v5 = vpop.f32.mrb[98].mxu1 }
 0x20f   :  { %v2174_v61 = vmax.f32 %v4785_v36, %v3769_v5  ;;  %v2111_v62 = vpop.f32.mrb[99].mxu1 }
 0x210   :  { %v2172_v27 = vmax.f32 %v4788_v42, %v2111_v62 }
 0x211   :  { %v3762_v63 = vpop.f32.mrb[108].mxu0 }
 0x212   :  { %v4817_v10 = vmax.f32 %v1879_v51, %v3762_v63  ;;  %v2003_v12 = vpop.f32.mrb[109].mxu0 }
 0x213   :  { %v4819_v8 = vmax.f32 %v1877_v54, %v2003_v12  ;;  %v3763_v29 = vpop.f32.mrb[110].mxu0 }
 0x214   :  { %v4821_v9 = vmax.f32 %v1880_v55, %v3763_v29  ;;  %v2006_v30 = vpop.f32.mrb[111].mxu0  ;;  %v3772_v16 = vpop.f32.mrb[100].mxu1 }
 0x215   :  { %v4823_v17 = vmax.f32 %v1878_v0, %v2006_v30  ;;  %v2177_v7 = vmax.f32 %v4793_v47, %v3772_v16  ;;  %v2124_v31 = vpop.f32.mrb[101].mxu1 }
 0x216   :  { %v2175_v18 = vmax.f32 %v4795_v13, %v2124_v31  ;;  %v3773_v20 = vpop.f32.mrb[102].mxu1 }
 0x217   :  { %v2178_v24 = vmax.f32 %v4797_v14, %v3773_v20  ;;  %v2127_v25 = vpop.f32.mrb[103].mxu1 }
 0x218   :  { %v2176_v26 = vmax.f32 %v4800_v52, %v2127_v25 }
 0x219   :  { %v3786_v28 = vpop.f32.mrb[112].mxu0 }
 0x21a   :  { %v4829_v32 = vmax.f32 %v2173_v4, %v3786_v28  ;;  %v2261_v35 = vpop.f32.mrb[113].mxu0 }
 0x21b   :  { %v4831_v33 = vmax.f32 %v2171_v60, %v2261_v35  ;;  %v3787_v34 = vpop.f32.mrb[114].mxu0 }
 0x21c   :  { %v4833_v36 = vmax.f32 %v2174_v61, %v3787_v34  ;;  %v3776_v40 = vpop.f32.mrb[104].mxu1  ;;  %v2264_v41 = vpop.f32.mrb[115].mxu0 }
 0x21d   :  { %v2181_v37 = vmax.f32 %v4805_v23, %v3776_v40  ;;  %v4836_v42 = vmax.f32 %v2172_v27, %v2264_v41  ;;  %v2140_v43 = vpop.f32.mrb[105].mxu1 }
 0x21e   :  { %v2179_v38 = vmax.f32 %v4807_v2, %v2140_v43  ;;  %v3777_v44 = vpop.f32.mrb[106].mxu1 }
 0x21f   :  { %v2182_v45 = vmax.f32 %v4809_v58, %v3777_v44  ;;  %v2143_v39 = vpop.f32.mrb[107].mxu1 }
 0x220   :  { %v2180_v11 = vmax.f32 %v4811_v3, %v2143_v39 }
 0x221   :  { %v3790_v46 = vpop.f32.mrb[116].mxu0 }
 0x222   :  { %v4841_v47 = vmax.f32 %v2177_v7, %v3790_v46  ;;  %v2277_v48 = vpop.f32.mrb[117].mxu0 }
 0x223   :  { %v4843_v13 = vmax.f32 %v2175_v18, %v2277_v48  ;;  %v3791_v49 = vpop.f32.mrb[118].mxu0 }
 0x224   :  { %v4845_v14 = vmax.f32 %v2178_v24, %v3791_v49  ;;  %v3780_v15 = vpop.f32.mrb[108].mxu1  ;;  %v2280_v50 = vpop.f32.mrb[119].mxu0 }
 0x225   :  { %v2185_v51 = vmax.f32 %v4817_v10, %v3780_v15  ;;  %v4848_v52 = vmax.f32 %v2176_v26, %v2280_v50  ;;  %v2156_v53 = vpop.f32.mrb[109].mxu1 }
 0x226   :  { %v2183_v54 = vmax.f32 %v4819_v8, %v2156_v53  ;;  %v3781_v19 = vpop.f32.mrb[110].mxu1 }
 0x227   :  { %v2186_v55 = vmax.f32 %v4821_v9, %v3781_v19  ;;  %v2159_v21 = vpop.f32.mrb[111].mxu1 }
 0x228   :  { %v2184_v0 = vmax.f32 %v4823_v17, %v2159_v21 }
 0x229   :  { %v3794_v22 = vpop.f32.mrb[120].mxu0 }
 0x22a   :  { %v4853_v23 = vmax.f32 %v2181_v37, %v3794_v22  ;;  %v2293_v56 = vpop.f32.mrb[121].mxu0 }
 0x22b   :  { %v4855_v2 = vmax.f32 %v2179_v38, %v2293_v56  ;;  %v3795_v57 = vpop.f32.mrb[122].mxu0 }
 0x22c   :  { %v4857_v58 = vmax.f32 %v2182_v45, %v3795_v57  ;;  %v2296_v59 = vpop.f32.mrb[123].mxu0  ;;  %v3804_v1 = vpop.f32.mrb[112].mxu1 }
 0x22d   :  { %v4859_v3 = vmax.f32 %v2180_v11, %v2296_v59  ;;  %v2479_v4 = vmax.f32 %v4829_v32, %v3804_v1  ;;  %v2414_v6 = vpop.f32.mrb[113].mxu1 }
 0x22e   :  { %v2477_v60 = vmax.f32 %v4831_v33, %v2414_v6  ;;  %v3805_v5 = vpop.f32.mrb[114].mxu1 }
 0x22f   :  { %v2480_v61 = vmax.f32 %v4833_v36, %v3805_v5  ;;  %v2417_v62 = vpop.f32.mrb[115].mxu1 }
 0x230   :  { %v2478_v27 = vmax.f32 %v4836_v42, %v2417_v62 }
 0x231   :  { %v3798_v63 = vpop.f32.mrb[124].mxu0 }
 0x232   :  { %v4865_v10 = vmax.f32 %v2185_v51, %v3798_v63  ;;  %v2309_v12 = vpop.f32.mrb[125].mxu0 }
 0x233   :  { %v4867_v8 = vmax.f32 %v2183_v54, %v2309_v12  ;;  %v3799_v29 = vpop.f32.mrb[126].mxu0 }
 0x234   :  { %v4869_v9 = vmax.f32 %v2186_v55, %v3799_v29  ;;  %v2312_v30 = vpop.f32.mrb[127].mxu0  ;;  %v3808_v16 = vpop.f32.mrb[116].mxu1 }
 0x235   :  { %v4871_v17 = vmax.f32 %v2184_v0, %v2312_v30  ;;  %v2483_v7 = vmax.f32 %v4841_v47, %v3808_v16  ;;  %v2430_v31 = vpop.f32.mrb[117].mxu1 }
 0x236   :  { %v2481_v18 = vmax.f32 %v4843_v13, %v2430_v31  ;;  %v3809_v20 = vpop.f32.mrb[118].mxu1 }
 0x237   :  { %v2484_v24 = vmax.f32 %v4845_v14, %v3809_v20  ;;  %v2433_v25 = vpop.f32.mrb[119].mxu1 }
 0x238   :  { %v2482_v26 = vmax.f32 %v4848_v52, %v2433_v25 }
 0x239   :  { %v3822_v28 = vpop.f32.mrb[128].mxu0 }
 0x23a   :  { %v4877_v32 = vmax.f32 %v2479_v4, %v3822_v28  ;;  %v2567_v35 = vpop.f32.mrb[129].mxu0 }
 0x23b   :  { %v4879_v33 = vmax.f32 %v2477_v60, %v2567_v35  ;;  %v3823_v34 = vpop.f32.mrb[130].mxu0 }
 0x23c   :  { %v4881_v36 = vmax.f32 %v2480_v61, %v3823_v34  ;;  %v3812_v40 = vpop.f32.mrb[120].mxu1  ;;  %v2570_v41 = vpop.f32.mrb[131].mxu0 }
 0x23d   :  { %v2487_v37 = vmax.f32 %v4853_v23, %v3812_v40  ;;  %v4884_v42 = vmax.f32 %v2478_v27, %v2570_v41  ;;  %v2446_v43 = vpop.f32.mrb[121].mxu1 }
 0x23e   :  { %v2485_v38 = vmax.f32 %v4855_v2, %v2446_v43  ;;  %v3813_v44 = vpop.f32.mrb[122].mxu1 }
 0x23f   :  { %v2488_v45 = vmax.f32 %v4857_v58, %v3813_v44  ;;  %v2449_v39 = vpop.f32.mrb[123].mxu1 }
 0x240   :  { %v2486_v11 = vmax.f32 %v4859_v3, %v2449_v39 }
 0x241   :  { %v3826_v46 = vpop.f32.mrb[132].mxu0 }
 0x242   :  { %v4889_v47 = vmax.f32 %v2483_v7, %v3826_v46  ;;  %v2583_v48 = vpop.f32.mrb[133].mxu0 }
 0x243   :  { %v4891_v13 = vmax.f32 %v2481_v18, %v2583_v48  ;;  %v3827_v49 = vpop.f32.mrb[134].mxu0 }
 0x244   :  { %v4893_v14 = vmax.f32 %v2484_v24, %v3827_v49  ;;  %v3816_v15 = vpop.f32.mrb[124].mxu1  ;;  %v2586_v50 = vpop.f32.mrb[135].mxu0 }
 0x245   :  { %v2491_v51 = vmax.f32 %v4865_v10, %v3816_v15  ;;  %v4896_v52 = vmax.f32 %v2482_v26, %v2586_v50  ;;  %v2462_v53 = vpop.f32.mrb[125].mxu1 }
 0x246   :  { %v2489_v54 = vmax.f32 %v4867_v8, %v2462_v53  ;;  %v3817_v19 = vpop.f32.mrb[126].mxu1 }
 0x247   :  { %v2492_v55 = vmax.f32 %v4869_v9, %v3817_v19  ;;  %v2465_v21 = vpop.f32.mrb[127].mxu1 }
 0x248   :  { %v2490_v0 = vmax.f32 %v4871_v17, %v2465_v21 }
 0x249   :  { %v3830_v22 = vpop.f32.mrb[136].mxu0 }
 0x24a   :  { %v4901_v23 = vmax.f32 %v2487_v37, %v3830_v22  ;;  %v2599_v56 = vpop.f32.mrb[137].mxu0 }
 0x24b   :  { %v4903_v2 = vmax.f32 %v2485_v38, %v2599_v56  ;;  %v3831_v57 = vpop.f32.mrb[138].mxu0 }
 0x24c   :  { %v4905_v58 = vmax.f32 %v2488_v45, %v3831_v57  ;;  %v2602_v59 = vpop.f32.mrb[139].mxu0  ;;  %v3840_v1 = vpop.f32.mrb[128].mxu1 }
 0x24d   :  { %v4907_v3 = vmax.f32 %v2486_v11, %v2602_v59  ;;  %v2785_v4 = vmax.f32 %v4877_v32, %v3840_v1  ;;  %v2720_v6 = vpop.f32.mrb[129].mxu1 }
 0x24e   :  { %v2783_v60 = vmax.f32 %v4879_v33, %v2720_v6  ;;  %v3841_v5 = vpop.f32.mrb[130].mxu1 }
 0x24f   :  { %v2786_v61 = vmax.f32 %v4881_v36, %v3841_v5  ;;  %v2723_v62 = vpop.f32.mrb[131].mxu1 }
 0x250   :  { %v2784_v27 = vmax.f32 %v4884_v42, %v2723_v62 }
 0x251   :  { %v3834_v63 = vpop.f32.mrb[140].mxu0 }
 0x252   :  { %v4913_v10 = vmax.f32 %v2491_v51, %v3834_v63  ;;  %v2615_v12 = vpop.f32.mrb[141].mxu0 }
 0x253   :  { %v4915_v8 = vmax.f32 %v2489_v54, %v2615_v12  ;;  %v3835_v29 = vpop.f32.mrb[142].mxu0 }
 0x254   :  { %v4917_v9 = vmax.f32 %v2492_v55, %v3835_v29  ;;  %v2618_v30 = vpop.f32.mrb[143].mxu0  ;;  %v3844_v16 = vpop.f32.mrb[132].mxu1 }
 0x255   :  { %v4919_v17 = vmax.f32 %v2490_v0, %v2618_v30  ;;  %v2789_v7 = vmax.f32 %v4889_v47, %v3844_v16  ;;  %v2736_v31 = vpop.f32.mrb[133].mxu1 }
 0x256   :  { %v2787_v18 = vmax.f32 %v4891_v13, %v2736_v31  ;;  %v3845_v20 = vpop.f32.mrb[134].mxu1 }
 0x257   :  { %v2790_v24 = vmax.f32 %v4893_v14, %v3845_v20  ;;  %v2739_v25 = vpop.f32.mrb[135].mxu1 }
 0x258   :  { %v2788_v26 = vmax.f32 %v4896_v52, %v2739_v25 }
 0x259   :  { %v3858_v28 = vpop.f32.mrb[144].mxu0 }
 0x25a   :  { %v2938_v32 = vmax.f32 %v2785_v4, %v3858_v28  ;;  %v2873_v35 = vpop.f32.mrb[145].mxu0 }
 0x25b   :  { %v2936_v33 = vmax.f32 %v2783_v60, %v2873_v35  ;;  %v3859_v34 = vpop.f32.mrb[146].mxu0 }
 0x25c   :  { %v2939_v36 = vmax.f32 %v2786_v61, %v3859_v34  ;;  %v3848_v40 = vpop.f32.mrb[136].mxu1  ;;  %v2876_v41 = vpop.f32.mrb[147].mxu0 }
 0x25d   :  { %v2793_v37 = vmax.f32 %v4901_v23, %v3848_v40  ;;  %v2937_v42 = vmax.f32 %v2784_v27, %v2876_v41  ;;  %v2752_v43 = vpop.f32.mrb[137].mxu1 }
 0x25e   :  { %v2791_v38 = vmax.f32 %v4903_v2, %v2752_v43  ;;  %v3849_v44 = vpop.f32.mrb[138].mxu1 }
 0x25f   :  { %v2794_v45 = vmax.f32 %v4905_v58, %v3849_v44  ;;  %v2755_v39 = vpop.f32.mrb[139].mxu1 }
 0x260   :  { %v2792_v11 = vmax.f32 %v4907_v3, %v2755_v39  ;;  %v4950_v3 = vld [vmem:[%s5056_s2] ss:$0 sm:$0xff] }
 0x261   :  { %v3862_v46 = vpop.f32.mrb[148].mxu0 }
 0x262   :  { %v4929_v47 = vmax.f32 %v2789_v7, %v3862_v46  ;;  %v2889_v48 = vpop.f32.mrb[149].mxu0 }
 0x263   :  { %v4931_v13 = vmax.f32 %v2787_v18, %v2889_v48  ;;  %v3863_v49 = vpop.f32.mrb[150].mxu0 }
 0x264   :  { %v4933_v14 = vmax.f32 %v2790_v24, %v3863_v49  ;;  %v3852_v15 = vpop.f32.mrb[140].mxu1  ;;  %v2892_v50 = vpop.f32.mrb[151].mxu0 }
 0x265   :  { %v2797_v51 = vmax.f32 %v4913_v10, %v3852_v15  ;;  %v4936_v52 = vmax.f32 %v2788_v26, %v2892_v50  ;;  %v2768_v53 = vpop.f32.mrb[141].mxu1 }
 0x266   :  { %v2795_v54 = vmax.f32 %v4915_v8, %v2768_v53  ;;  %v3853_v19 = vpop.f32.mrb[142].mxu1 }
 0x267   :  { %v2798_v55 = vmax.f32 %v4917_v9, %v3853_v19  ;;  %v2771_v21 = vpop.f32.mrb[143].mxu1 }
 0x268   :  { %v2796_v0 = vmax.f32 %v4919_v17, %v2771_v21 }
 0x269   :  { %v3866_v22 = vpop.f32.mrb[152].mxu0 }
 0x26a   :  { %v4941_v23 = vmax.f32 %v2793_v37, %v3866_v22  ;;  %v2905_v56 = vpop.f32.mrb[153].mxu0 }
 0x26b   :  { %v4943_v2 = vmax.f32 %v2791_v38, %v2905_v56  ;;  %v3867_v57 = vpop.f32.mrb[154].mxu0 }
 0x26c   :  { %v4945_v58 = vmax.f32 %v2794_v45, %v3867_v57  ;;  %v2908_v59 = vpop.f32.mrb[155].mxu0  ;;  %v3876_v1 = vpop.f32.mrb[144].mxu1 }
 0x26d   :  { %v4952_v4 = vmax.f32 %v2792_v11, %v2908_v59  ;;  %v3091_v6 = vmax.f32 %v2938_v32, %v3876_v1  ;;  %v3026_v60 = vpop.f32.mrb[145].mxu1 }
 0x26e   :  { %v3089_v5 = vmax.f32 %v2936_v33, %v3026_v60  ;;  %v3877_v61 = vpop.f32.mrb[146].mxu1 }
 0x26f   :  { %v3114_v62 = vadd.f32 %v4950_v3, %v3091_v6  ;;  %v3092_v27 = vmax.f32 %v2939_v36, %v3877_v61  ;;  %v3029_v63 = vpop.f32.mrb[147].mxu1 }
 0x270   :  { %v3112_v10 = vadd.f32 %v4950_v3, %v3089_v5  ;;  %v3090_v12 = vmax.f32 %v2937_v42, %v3029_v63 }
 0x271   :  { %v3130_v8 = vmul.f32 0.2, %v3114_v62  ;;  %v3115_v29 = vadd.f32 %v4950_v3, %v3092_v27  ;;  %v3870_v9 = vpop.f32.mrb[156].mxu0 }
 0x272   :  { %v3128_v30 = vmul.f32 0.2, %v3112_v10  ;;  %v3113_v16 = vadd.f32 %v4950_v3, %v3090_v12  ;;  %v4958_v17 = vmax.f32 %v2797_v51, %v3870_v9  ;;  %v2921_v7 = vpop.f32.mrb[157].mxu0 }
 0x273   :  { %v3146_v31 = vmax.f32 %v3114_v62, %v3130_v8  ;;  %v3131_v18 = vmul.f32 0.2, %v3115_v29  ;;  %v4960_v20 = vmax.f32 %v2795_v54, %v2921_v7  ;;  %v3871_v24 = vpop.f32.mrb[158].mxu0 }
 0x274   :  { %v3144_v25 = vmax.f32 %v3112_v10, %v3128_v30  ;;  %v3129_v26 = vmul.f32 0.2, %v3113_v16  ;;  %v4962_v28 = vmax.f32 %v2798_v55, %v3871_v24  ;;  %v2924_v32 = vpop.f32.mrb[159].mxu0  ;;  %v3880_v35 = vpop.f32.mrb[148].mxu1 }
 0x275   :  { %3163 = vst.msk [vmem:[%s5057_s3 + $0x10] sm:$0xff] %vm3160_vm2, %v3146_v31  ;;  %v3147_v33 = vmax.f32 %v3115_v29, %v3131_v18  ;;  %v4968_v34 = vmax.f32 %v2796_v0, %v2924_v32  ;;  %v3095_v36 = vmax.f32 %v4929_v47, %v3880_v35  ;;  %v3042_v40 = vpop.f32.mrb[149].mxu1 }
 0x276   :  { %3161 = vst.msk [vmem:[%s5057_s3] sm:$0xff] %vm3160_vm2, %v3144_v25  ;;  %v3145_v41 = vmax.f32 %v3113_v16, %v3129_v26  ;;  %v3093_v37 = vmax.f32 %v4931_v13, %v3042_v40  ;;  %v3881_v42 = vpop.f32.mrb[150].mxu1 }
 0x277   :  { %3164 = vst.msk [vmem:[%s5057_s3 + $0x18] sm:$0xff] %vm3160_vm2, %v3147_v33  ;;  %v3118_v43 = vadd.f32 %v4950_v3, %v3095_v36  ;;  %v3096_v38 = vmax.f32 %v4933_v14, %v3881_v42  ;;  %v3045_v44 = vpop.f32.mrb[151].mxu1 }
 0x278   :  { %3162 = vst.msk [vmem:[%s5057_s3 + $0x8] sm:$0xff] %vm3160_vm2, %v3145_v41  ;;  %v3116_v45 = vadd.f32 %v4950_v3, %v3093_v37  ;;  %v3094_v39 = vmax.f32 %v4936_v52, %v3045_v44 }
 0x279   :  { %v3134_v11 = vmul.f32 0.2, %v3118_v43  ;;  %v3119_v46 = vadd.f32 %v4950_v3, %v3096_v38 }
 0x27a   :  { %v3132_v47 = vmul.f32 0.2, %v3116_v45  ;;  %v3117_v48 = vadd.f32 %v4950_v3, %v3094_v39 }
 0x27b   :  { %v3150_v13 = vmax.f32 %v3118_v43, %v3134_v11  ;;  %v3135_v49 = vmul.f32 0.2, %v3119_v46 }
 0x27c   :  { %v3148_v15 = vmax.f32 %v3116_v45, %v3132_v47  ;;  %v3133_v14 = vmul.f32 0.2, %v3117_v48  ;;  %v3884_v50 = vpop.f32.mrb[152].mxu1 }
 0x27d   :  { %3167 = vst.msk [vmem:[%s5057_s3 + $0x30] sm:$0xff] %vm3160_vm2, %v3150_v13  ;;  %v3151_v51 = vmax.f32 %v3119_v46, %v3135_v49  ;;  %v3099_v53 = vmax.f32 %v4941_v23, %v3884_v50  ;;  %v3058_v52 = vpop.f32.mrb[153].mxu1 }
 0x27e   :  { %3165 = vst.msk [vmem:[%s5057_s3 + $0x20] sm:$0xff] %vm3160_vm2, %v3148_v15  ;;  %v3149_v54 = vmax.f32 %v3117_v48, %v3133_v14  ;;  %v3097_v19 = vmax.f32 %v4943_v2, %v3058_v52  ;;  %v3885_v55 = vpop.f32.mrb[154].mxu1 }
 0x27f   :  { %3168 = vst.msk [vmem:[%s5057_s3 + $0x38] sm:$0xff] %vm3160_vm2, %v3151_v51  ;;  %v3122_v21 = vadd.f32 %v4950_v3, %v3099_v53  ;;  %v3100_v0 = vmax.f32 %v4945_v58, %v3885_v55  ;;  %v3061_v22 = vpop.f32.mrb[155].mxu1 }
 0x280   :  { %3166 = vst.msk [vmem:[%s5057_s3 + $0x28] sm:$0xff] %vm3160_vm2, %v3149_v54  ;;  %v3120_v23 = vadd.f32 %v4950_v3, %v3097_v19  ;;  %v3098_v56 = vmax.f32 %v4952_v4, %v3061_v22 }
 0x281   :  { %v3138_v2 = vmul.f32 0.2, %v3122_v21  ;;  %v3123_v57 = vadd.f32 %v4950_v3, %v3100_v0 }
 0x282   :  { %v3136_v59 = vmul.f32 0.2, %v3120_v23  ;;  %v3121_v1 = vadd.f32 %v4950_v3, %v3098_v56 }
 0x283   :  { %v3154_v6 = vmax.f32 %v3122_v21, %v3138_v2  ;;  %v3139_v60 = vmul.f32 0.2, %v3123_v57 }
 0x284   :  { %v3152_v5 = vmax.f32 %v3120_v23, %v3136_v59  ;;  %v3137_v58 = vmul.f32 0.2, %v3121_v1  ;;  %v3888_v61 = vpop.f32.mrb[156].mxu1 }
 0x285   :  { %3171 = vst.msk [vmem:[%s5057_s3 + $0x50] sm:$0xff] %vm3160_vm2, %v3154_v6  ;;  %v3155_v62 = vmax.f32 %v3123_v57, %v3139_v60  ;;  %v3103_v27 = vmax.f32 %v4958_v17, %v3888_v61  ;;  %v3074_v4 = vpop.f32.mrb[157].mxu1 }
 0x286   :  { %3169 = vst.msk [vmem:[%s5057_s3 + $0x40] sm:$0xff] %vm3160_vm2, %v3152_v5  ;;  %v3153_v63 = vmax.f32 %v3121_v1, %v3137_v58  ;;  %v3101_v10 = vmax.f32 %v4960_v20, %v3074_v4  ;;  %v3889_v12 = vpop.f32.mrb[158].mxu1 }
 0x287   :  { %3172 = vst.msk [vmem:[%s5057_s3 + $0x58] sm:$0xff] %vm3160_vm2, %v3155_v62  ;;  %v3126_v8 = vadd.f32 %v4950_v3, %v3103_v27  ;;  %v3104_v29 = vmax.f32 %v4962_v28, %v3889_v12  ;;  %v3077_v9 = vpop.f32.mrb[159].mxu1 }
 0x288   :  { %3170 = vst.msk [vmem:[%s5057_s3 + $0x48] sm:$0xff] %vm3160_vm2, %v3153_v63  ;;  %v3124_v30 = vadd.f32 %v4950_v3, %v3101_v10  ;;  %v3102_v16 = vmax.f32 %v4968_v34, %v3077_v9 }
 0x289   :  { %v3142_v17 = vmul.f32 0.2, %v3126_v8  ;;  %v3127_v7 = vadd.f32 %v4950_v3, %v3104_v29 }
 0x28a   :  { %v3140_v31 = vmul.f32 0.2, %v3124_v30  ;;  %v3125_v18 = vadd.f32 %v4950_v3, %v3102_v16 }
 0x28b   :  { %v3158_v20 = vmax.f32 %v3126_v8, %v3142_v17  ;;  %v3143_v24 = vmul.f32 0.2, %v3127_v7 }
 0x28c   :  { %v3156_v25 = vmax.f32 %v3124_v30, %v3140_v31  ;;  %v3141_v26 = vmul.f32 0.2, %v3125_v18 }
 0x28d   :  { %3175 = vst.msk [vmem:[%s5057_s3 + $0x70] sm:$0xff] %vm3160_vm2, %v3158_v20  ;;  %v3159_v28 = vmax.f32 %v3127_v7, %v3143_v24 }
 0x28e   :  { %3173 = vst.msk [vmem:[%s5057_s3 + $0x60] sm:$0xff] %vm3160_vm2, %v3156_v25  ;;  %v3157_v32 = vmax.f32 %v3125_v18, %v3141_v26 }
 0x28f   :  { %3176 = vst.msk [vmem:[%s5057_s3 + $0x78] sm:$0xff] %vm3160_vm2, %v3159_v28 }
 0x290   :  { %3174 = vst.msk [vmem:[%s5057_s3 + $0x68] sm:$0xff] %vm3160_vm2, %v3157_v32 }

</bundles_post_ra>
